<compile_context>
chip_gen: v7x
topology: tpu7x:2x2x1
jax: 0.10.0
libtpu: 0.0.40
codegen_flags: <defaults>
</compile_context>

<pallas_src>
from functools import partial

import jax
import jax.numpy as jnp
from jax.experimental import pallas as pl
from jax.experimental.pallas import tpu as pltpu

T_DIFFUSION = 50
INPUT_L = 64      # fourier input embedding size (2 * 32)
TIME_L = 32       # fourier time embedding size  (2 * 16)
NH = 64           # hidden width
EMB = INPUT_L + TIME_L  # 96

DEFAULT_TILE_N = 2048   # ~ (96+5*64)*TILE_N*4B of activations + 80 KB weights
                        # comfortably fits default scoped VMEM on v5e/v6e/v7x.


def _round_up(x, m):
    return ((x + m - 1) // m) * m


def denoising_mlp_kernel(
    xt_ref, t_ref, inB0_ref, inB1_ref, tB_ref,
    w1_ref, b1_ref, w2_ref, b2_ref, w3_ref, b3_ref,
    w4_ref, b4_ref, w5_ref, b5_ref,
    out_ref, emb_ref,
):
    f32 = jnp.float32

    # ---- input fourier projection on the VPU (K=2 -> broadcast FMAs) ----
    # x_proj[f, n] = input_B[f, 0] * xt[0, n] + input_B[f, 1] * xt[1, n]
    xt = xt_ref[...]                                           # (2, TN)
    x_proj = (inB0_ref[...] * xt[0:1, :]                       # (32,1)*(1,TN)
              + inB1_ref[...] * xt[1:2, :])                    # -> (32, TN)

    # ---- time fourier projection on the VPU (K=1 -> broadcast mul) ----
    t_scaled = t_ref[...] * (1.0 / T_DIFFUSION) - 0.5          # (1, TN)
    t_proj = tB_ref[...] * t_scaled                            # (16,1)*(1,TN) -> (16, TN)

    # ---- build the (96, TN) embedding in a VMEM scratch (sublane concat) ----
    emb_ref[0:32, :] = jnp.sin(x_proj)
    emb_ref[32:64, :] = jnp.cos(x_proj)
    emb_ref[64:80, :] = jnp.sin(t_proj)
    emb_ref[80:96, :] = jnp.cos(t_proj)

    # ---- layer 1: single K=96 matmul (feature-major: h = W1^T-layout @ emb) ----
    h = jnp.dot(w1_ref[...], emb_ref[...], preferred_element_type=f32) + b1_ref[...]
    h = jnp.maximum(h, 0.0)                                    # (64, TN)

    # ---- hidden layers 2..4 ----
    h = jnp.maximum(jnp.dot(w2_ref[...], h, preferred_element_type=f32) + b2_ref[...], 0.0)
    h = jnp.maximum(jnp.dot(w3_ref[...], h, preferred_element_type=f32) + b3_ref[...], 0.0)
    h = jnp.maximum(jnp.dot(w4_ref[...], h, preferred_element_type=f32) + b4_ref[...], 0.0)

    # ---- output layer: (2, 64) @ (64, TN) -> lane-dense (2, TN) store ----
    out_ref[...] = jnp.dot(w5_ref[...], h, preferred_element_type=f32) + b5_ref[...]


@partial(jax.jit, static_argnames=("tile_n",))
def denoising_mlp_forward(xt, t, prepared, *, tile_n=DEFAULT_TILE_N):
    """xt: (N, 2) f32, t: (N,) f32, prepared = prepare_params(params).

    Returns (N, 2) f32.
    """
    N = xt.shape[0]
    tn = min(tile_n, _round_up(max(N, 1), 128))      # lane-aligned tile
    n_pad = _round_up(N, tn)

    # Zero-pad ragged batch, flip to feature-major (batch on lanes).
    xt_p = jnp.zeros((n_pad, 2), jnp.float32).at[:N].set(xt.astype(jnp.float32))
    t_p = jnp.zeros((n_pad,), jnp.float32).at[:N].set(t.astype(jnp.float32))
    xt_t = xt_p.T                      # (2, n_pad)
    t_t = t_p.reshape(1, n_pad)        # (1, n_pad)

    (inB0, inB1, tB,
     W1t, b1, W2t, b2, W3t, b3, W4t, b4, W5t, b5) = prepared

    resident = lambda a: pl.BlockSpec(a.shape, lambda i: (0, 0))

    out_t = pl.pallas_call(
        denoising_mlp_kernel,
        out_shape=jax.ShapeDtypeStruct((2, n_pad), jnp.float32),
        grid=(n_pad // tn,),
        in_specs=[
            pl.BlockSpec((2, tn), lambda i: (0, i)),    # xt (feature-major)
            pl.BlockSpec((1, tn), lambda i: (0, i)),    # t
            resident(inB0), resident(inB1), resident(tB),
            resident(W1t), resident(b1),
            resident(W2t), resident(b2),
            resident(W3t), resident(b3),
            resident(W4t), resident(b4),
            resident(W5t), resident(b5),
        ],
        out_specs=pl.BlockSpec((2, tn), lambda i: (0, i)),
        scratch_shapes=[pltpu.VMEM((EMB, tn), jnp.float32)],
        compiler_params=pltpu.CompilerParams(
            dimension_semantics=("parallel",)),
    )(xt_t, t_t, inB0, inB1, tB, W1t, b1, W2t, b2, W3t, b3, W4t, b4, W5t, b5)

    return out_t[:, :N].T


def init_params(key):
    """Deterministic parameter init matching the torch module's shapes.

    Linear weights are stored as (in, out); biases as (out,).
    """
    ks = jax.random.split(key, 16)
    input_B = jax.random.normal(ks[0], (INPUT_L // 2, 2), jnp.float32)   # (32, 2)
    time_B = jax.random.normal(ks[1], (TIME_L // 2, 1), jnp.float32)     # (16, 1)

    def linear(kw, kb, fan_in, fan_out):
        bound = 1.0 / jnp.sqrt(fan_in)
        W = jax.random.uniform(kw, (fan_in, fan_out), jnp.float32, -bound, bound)
        b = jax.random.uniform(kb, (fan_out,), jnp.float32, -bound, bound)
        return W, b

    W1, b1 = linear(ks[2], ks[3], EMB, NH)   # (96, 64)
    W2, b2 = linear(ks[4], ks[5], NH, NH)
    W3, b3 = linear(ks[6], ks[7], NH, NH)
    W4, b4 = linear(ks[8], ks[9], NH, NH)
    W5, b5 = linear(ks[10], ks[11], NH, 2)
    return (input_B, time_B, W1, b1, W2, b2, W3, b3, W4, b4, W5, b5)


def prepare_params(params):
    """One-time layout prep for the kernel (feature-major weights, 2-D biases)."""
    (input_B, time_B, W1, b1, W2, b2, W3, b3, W4, b4, W5, b5) = params
    f32 = jnp.float32
    return (
        input_B[:, 0:1].astype(f32),            # (32, 1) -> column 0 of input_B
        input_B[:, 1:2].astype(f32),            # (32, 1) -> column 1 of input_B
        time_B.astype(f32),                     # (16, 1)
        W1.T.astype(f32), b1.reshape(-1, 1).astype(f32),   # (64, 96), (64, 1)
        W2.T.astype(f32), b2.reshape(-1, 1).astype(f32),
        W3.T.astype(f32), b3.reshape(-1, 1).astype(f32),
        W4.T.astype(f32), b4.reshape(-1, 1).astype(f32),
        W5.T.astype(f32), b5.reshape(-1, 1).astype(f32),   # (2, 64), (2, 1)
    )


def reference_forward(xt, t, params):
    """Pure-JAX reference mirroring the torch forward.

    The tiny fourier dots use Precision.HIGHEST so the reference matches the
    exact-f32 math torch does on CPU (and the kernel's VPU FMAs).
    """
    (input_B, time_B, W1, b1, W2, b2, W3, b3, W4, b4, W5, b5) = params
    hi = jax.lax.Precision.HIGHEST
    xe = jnp.dot(input_B, xt.T, precision=hi).T                     # (N, 32)
    xe = jnp.concatenate([jnp.sin(xe), jnp.cos(xe)], axis=1)        # (N, 64)
    tt = t / T_DIFFUSION - 0.5
    te = jnp.dot(time_B, tt[None, :], precision=hi).T               # (N, 16)
    te = jnp.concatenate([jnp.sin(te), jnp.cos(te)], axis=1)        # (N, 32)
    x = jnp.concatenate([xe, te.reshape(-1, TIME_L)], axis=1)       # (N, 96)
    h = jax.nn.relu(x @ W1 + b1)
    h = jax.nn.relu(h @ W2 + b2)
    h = jax.nn.relu(h @ W3 + b3)
    h = jax.nn.relu(h @ W4 + b4)
    return h @ W5 + b5


if __name__ == "__main__":
    key = jax.random.PRNGKey(0)
    k_params, k_x, k_t = jax.random.split(key, 3)

    params = init_params(k_params)
    prepared = prepare_params(params)   # hoisted out of the hot loop

    # --- small batch, single tile ---
    N = 8
    xt = jax.random.normal(k_x, (N, 2), jnp.float32)
    t = jax.random.randint(k_t, (N,), 0, T_DIFFUSION).astype(jnp.float32)

    out = jax.block_until_ready(denoising_mlp_forward(xt, t, prepared))
    ref = reference_forward(xt, t, params)
    assert out.shape == (N, 2)
    assert jnp.allclose(out, ref, atol=1e-3, rtol=1e-3), "mismatch vs JAX reference (N=8)"

    # --- ragged batch, multi-tile grid (exercises padding + pipelining) ---
    N2 = 300
    k_x2, k_t2 = jax.random.split(k_x)
    xt2 = jax.random.normal(k_x2, (N2, 2), jnp.float32)
    t2 = jax.random.randint(k_t2, (N2,), 0, T_DIFFUSION).astype(jnp.float32)

    out2 = jax.block_until_ready(denoising_mlp_forward(xt2, t2, prepared, tile_n=128))
    ref2 = reference_forward(xt2, t2, params)
    assert out2.shape == (N2, 2)
    assert jnp.allclose(out2, ref2, atol=1e-3, rtol=1e-3), "mismatch vs JAX reference (N=300)"

    print("KERNEL_OK")
</pallas_src>

<mosaic_0001>
module attributes {stable_mosaic.version = 11 : i64} {
  func.func @denoising_mlp_kernel(%arg0: i32, %arg1: memref<2x128xf32, #tpu.memory_space<vmem>>, %arg2: memref<1x128xf32, #tpu.memory_space<vmem>>, %arg3: memref<32x1xf32, #tpu.memory_space<vmem>>, %arg4: memref<32x1xf32, #tpu.memory_space<vmem>>, %arg5: memref<16x1xf32, #tpu.memory_space<vmem>>, %arg6: memref<64x96xf32, #tpu.memory_space<vmem>>, %arg7: memref<64x1xf32, #tpu.memory_space<vmem>>, %arg8: memref<64x64xf32, #tpu.memory_space<vmem>>, %arg9: memref<64x1xf32, #tpu.memory_space<vmem>>, %arg10: memref<64x64xf32, #tpu.memory_space<vmem>>, %arg11: memref<64x1xf32, #tpu.memory_space<vmem>>, %arg12: memref<64x64xf32, #tpu.memory_space<vmem>>, %arg13: memref<64x1xf32, #tpu.memory_space<vmem>>, %arg14: memref<2x64xf32, #tpu.memory_space<vmem>>, %arg15: memref<2x1xf32, #tpu.memory_space<vmem>>, %arg16: memref<2x128xf32, #tpu.memory_space<vmem>>, %arg17: memref<96x128xf32, #tpu.memory_space<vmem>>) attributes {dimension_semantics = [#tpu.dimension_semantics<parallel>], iteration_bounds = array<i64: 1>, scalar_prefetch = 0 : i64, scratch_operands = 1 : i64, tpu.core_type = #tpu.core_type<tc>, window_params = [{transform_indices = @transform_0, window_bounds = array<i64: 2, 128>}, {transform_indices = @transform_1, window_bounds = array<i64: 1, 128>}, {pipeline_mode = #tpu.pipeline_mode<synchronous>, transform_indices = @transform_2, window_bounds = array<i64: 32, 1>}, {pipeline_mode = #tpu.pipeline_mode<synchronous>, transform_indices = @transform_3, window_bounds = array<i64: 32, 1>}, {pipeline_mode = #tpu.pipeline_mode<synchronous>, transform_indices = @transform_4, window_bounds = array<i64: 16, 1>}, {pipeline_mode = #tpu.pipeline_mode<synchronous>, transform_indices = @transform_5, window_bounds = array<i64: 64, 96>}, {pipeline_mode = #tpu.pipeline_mode<synchronous>, transform_indices = @transform_6, window_bounds = array<i64: 64, 1>}, {pipeline_mode = #tpu.pipeline_mode<synchronous>, transform_indices = @transform_7, window_bounds = array<i64: 64, 64>}, {pipeline_mode = #tpu.pipeline_mode<synchronous>, transform_indices = @transform_8, window_bounds = array<i64: 64, 1>}, {pipeline_mode = #tpu.pipeline_mode<synchronous>, transform_indices = @transform_9, window_bounds = array<i64: 64, 64>}, {pipeline_mode = #tpu.pipeline_mode<synchronous>, transform_indices = @transform_10, window_bounds = array<i64: 64, 1>}, {pipeline_mode = #tpu.pipeline_mode<synchronous>, transform_indices = @transform_11, window_bounds = array<i64: 64, 64>}, {pipeline_mode = #tpu.pipeline_mode<synchronous>, transform_indices = @transform_12, window_bounds = array<i64: 64, 1>}, {pipeline_mode = #tpu.pipeline_mode<synchronous>, transform_indices = @transform_13, window_bounds = array<i64: 2, 64>}, {pipeline_mode = #tpu.pipeline_mode<synchronous>, transform_indices = @transform_14, window_bounds = array<i64: 2, 1>}, {transform_indices = @transform_15, window_bounds = array<i64: 2, 128>}]} {
    %c0 = arith.constant 0 : index
    %c0_0 = arith.constant 0 : index
    %0 = vector.load %arg1[%c0, %c0_0] : memref<2x128xf32, #tpu.memory_space<vmem>>, vector<2x128xf32>
    %c0_1 = arith.constant 0 : index
    %c0_2 = arith.constant 0 : index
    %1 = vector.load %arg3[%c0_1, %c0_2] : memref<32x1xf32, #tpu.memory_space<vmem>>, vector<32x1xf32>
    %2 = vector.extract_strided_slice %0 {offsets = [0, 0], sizes = [1, 128], strides = [1, 1]} : vector<2x128xf32> to vector<1x128xf32>
    %3 = vector.broadcast %1 : vector<32x1xf32> to vector<32x128xf32>
    %4 = vector.broadcast %2 : vector<1x128xf32> to vector<32x128xf32>
    %5 = arith.mulf %3, %4 : vector<32x128xf32>
    %c0_3 = arith.constant 0 : index
    %c0_4 = arith.constant 0 : index
    %6 = vector.load %arg4[%c0_3, %c0_4] : memref<32x1xf32, #tpu.memory_space<vmem>>, vector<32x1xf32>
    %7 = vector.extract_strided_slice %0 {offsets = [1, 0], sizes = [1, 128], strides = [1, 1]} : vector<2x128xf32> to vector<1x128xf32>
    %8 = vector.broadcast %6 : vector<32x1xf32> to vector<32x128xf32>
    %9 = vector.broadcast %7 : vector<1x128xf32> to vector<32x128xf32>
    %10 = arith.mulf %8, %9 : vector<32x128xf32>
    %11 = arith.addf %5, %10 : vector<32x128xf32>
    %c0_5 = arith.constant 0 : index
    %c0_6 = arith.constant 0 : index
    %12 = vector.load %arg2[%c0_5, %c0_6] : memref<1x128xf32, #tpu.memory_space<vmem>>, vector<1x128xf32>
    %cst = arith.constant 2.000000e-02 : f32
    %13 = vector.broadcast %cst : f32 to vector<1x128xf32>
    %14 = arith.mulf %12, %13 : vector<1x128xf32>
    %cst_7 = arith.constant 5.000000e-01 : f32
    %15 = vector.broadcast %cst_7 : f32 to vector<1x128xf32>
    %16 = arith.subf %14, %15 : vector<1x128xf32>
    %c0_8 = arith.constant 0 : index
    %c0_9 = arith.constant 0 : index
    %17 = vector.load %arg5[%c0_8, %c0_9] : memref<16x1xf32, #tpu.memory_space<vmem>>, vector<16x1xf32>
    %18 = vector.broadcast %17 : vector<16x1xf32> to vector<16x128xf32>
    %19 = vector.broadcast %16 : vector<1x128xf32> to vector<16x128xf32>
    %20 = arith.mulf %18, %19 : vector<16x128xf32>
    %21 = math.sin %11 : vector<32x128xf32>
    %c0_10 = arith.constant 0 : index
    %c0_11 = arith.constant 0 : index
    %22 = vector.load %arg17[%c0_10, %c0_11] : memref<96x128xf32, #tpu.memory_space<vmem>>, vector<32x128xf32>
    tpu.vector_store %arg17[%c0_10, %c0_11], %21 {strides = array<i32>} : memref<96x128xf32, #tpu.memory_space<vmem>>, vector<32x128xf32>,
    %23 = math.cos %11 : vector<32x128xf32>
    %c32 = arith.constant 32 : index
    %c0_12 = arith.constant 0 : index
    %24 = vector.load %arg17[%c32, %c0_12] : memref<96x128xf32, #tpu.memory_space<vmem>>, vector<32x128xf32>
    tpu.vector_store %arg17[%c32, %c0_12], %23 {strides = array<i32>} : memref<96x128xf32, #tpu.memory_space<vmem>>, vector<32x128xf32>,
    %25 = math.sin %20 : vector<16x128xf32>
    %c64 = arith.constant 64 : index
    %c0_13 = arith.constant 0 : index
    %26 = vector.load %arg17[%c64, %c0_13] : memref<96x128xf32, #tpu.memory_space<vmem>>, vector<16x128xf32>
    tpu.vector_store %arg17[%c64, %c0_13], %25 {strides = array<i32>} : memref<96x128xf32, #tpu.memory_space<vmem>>, vector<16x128xf32>,
    %27 = math.cos %20 : vector<16x128xf32>
    %c80 = arith.constant 80 : index
    %c0_14 = arith.constant 0 : index
    %28 = vector.load %arg17[%c80, %c0_14] : memref<96x128xf32, #tpu.memory_space<vmem>>, vector<16x128xf32>
    tpu.vector_store %arg17[%c80, %c0_14], %27 {strides = array<i32>} : memref<96x128xf32, #tpu.memory_space<vmem>>, vector<16x128xf32>,
    %c0_15 = arith.constant 0 : index
    %c0_16 = arith.constant 0 : index
    %29 = vector.load %arg6[%c0_15, %c0_16] : memref<64x96xf32, #tpu.memory_space<vmem>>, vector<64x96xf32>
    %c0_17 = arith.constant 0 : index
    %c0_18 = arith.constant 0 : index
    %30 = vector.load %arg17[%c0_17, %c0_18] : memref<96x128xf32, #tpu.memory_space<vmem>>, vector<96x128xf32>
    %cst_19 = arith.constant dense<0.000000e+00> : vector<64x128xf32>
    %31 = tpu.matmul %29, %30, %cst_19 {dimension_numbers = #tpu.dot_dimension_numbers<[1], [0], [0], [1], [0, 0, 1, 1], [], []>} : vector<64x96xf32>, vector<96x128xf32>, vector<64x128xf32> -> vector<64x128xf32>
    %c0_20 = arith.constant 0 : index
    %c0_21 = arith.constant 0 : index
    %32 = vector.load %arg7[%c0_20, %c0_21] : memref<64x1xf32, #tpu.memory_space<vmem>>, vector<64x1xf32>
    %33 = vector.broadcast %32 : vector<64x1xf32> to vector<64x128xf32>
    %34 = arith.addf %31, %33 : vector<64x128xf32>
    %cst_22 = arith.constant 0.000000e+00 : f32
    %35 = vector.broadcast %cst_22 : f32 to vector<64x128xf32>
    %36 = arith.maximumf %34, %35 : vector<64x128xf32>
    %c0_23 = arith.constant 0 : index
    %c0_24 = arith.constant 0 : index
    %37 = vector.load %arg8[%c0_23, %c0_24] : memref<64x64xf32, #tpu.memory_space<vmem>>, vector<64x64xf32>
    %cst_25 = arith.constant dense<0.000000e+00> : vector<64x128xf32>
    %38 = tpu.matmul %37, %36, %cst_25 {dimension_numbers = #tpu.dot_dimension_numbers<[1], [0], [0], [1], [0, 0, 1, 1], [], []>} : vector<64x64xf32>, vector<64x128xf32>, vector<64x128xf32> -> vector<64x128xf32>
    %c0_26 = arith.constant 0 : index
    %c0_27 = arith.constant 0 : index
    %39 = vector.load %arg9[%c0_26, %c0_27] : memref<64x1xf32, #tpu.memory_space<vmem>>, vector<64x1xf32>
    %40 = vector.broadcast %39 : vector<64x1xf32> to vector<64x128xf32>
    %41 = arith.addf %38, %40 : vector<64x128xf32>
    %cst_28 = arith.constant 0.000000e+00 : f32
    %42 = vector.broadcast %cst_28 : f32 to vector<64x128xf32>
    %43 = arith.maximumf %41, %42 : vector<64x128xf32>
    %c0_29 = arith.constant 0 : index
    %c0_30 = arith.constant 0 : index
    %44 = vector.load %arg10[%c0_29, %c0_30] : memref<64x64xf32, #tpu.memory_space<vmem>>, vector<64x64xf32>
    %cst_31 = arith.constant dense<0.000000e+00> : vector<64x128xf32>
    %45 = tpu.matmul %44, %43, %cst_31 {dimension_numbers = #tpu.dot_dimension_numbers<[1], [0], [0], [1], [0, 0, 1, 1], [], []>} : vector<64x64xf32>, vector<64x128xf32>, vector<64x128xf32> -> vector<64x128xf32>
    %c0_32 = arith.constant 0 : index
    %c0_33 = arith.constant 0 : index
    %46 = vector.load %arg11[%c0_32, %c0_33] : memref<64x1xf32, #tpu.memory_space<vmem>>, vector<64x1xf32>
    %47 = vector.broadcast %46 : vector<64x1xf32> to vector<64x128xf32>
    %48 = arith.addf %45, %47 : vector<64x128xf32>
    %cst_34 = arith.constant 0.000000e+00 : f32
    %49 = vector.broadcast %cst_34 : f32 to vector<64x128xf32>
    %50 = arith.maximumf %48, %49 : vector<64x128xf32>
    %c0_35 = arith.constant 0 : index
    %c0_36 = arith.constant 0 : index
    %51 = vector.load %arg12[%c0_35, %c0_36] : memref<64x64xf32, #tpu.memory_space<vmem>>, vector<64x64xf32>
    %cst_37 = arith.constant dense<0.000000e+00> : vector<64x128xf32>
    %52 = tpu.matmul %51, %50, %cst_37 {dimension_numbers = #tpu.dot_dimension_numbers<[1], [0], [0], [1], [0, 0, 1, 1], [], []>} : vector<64x64xf32>, vector<64x128xf32>, vector<64x128xf32> -> vector<64x128xf32>
    %c0_38 = arith.constant 0 : index
    %c0_39 = arith.constant 0 : index
    %53 = vector.load %arg13[%c0_38, %c0_39] : memref<64x1xf32, #tpu.memory_space<vmem>>, vector<64x1xf32>
    %54 = vector.broadcast %53 : vector<64x1xf32> to vector<64x128xf32>
    %55 = arith.addf %52, %54 : vector<64x128xf32>
    %cst_40 = arith.constant 0.000000e+00 : f32
    %56 = vector.broadcast %cst_40 : f32 to vector<64x128xf32>
    %57 = arith.maximumf %55, %56 : vector<64x128xf32>
    %c0_41 = arith.constant 0 : index
    %c0_42 = arith.constant 0 : index
    %58 = vector.load %arg14[%c0_41, %c0_42] : memref<2x64xf32, #tpu.memory_space<vmem>>, vector<2x64xf32>
    %cst_43 = arith.constant dense<0.000000e+00> : vector<2x128xf32>
    %59 = tpu.matmul %58, %57, %cst_43 {dimension_numbers = #tpu.dot_dimension_numbers<[1], [0], [0], [1], [0, 0, 1, 1], [], []>} : vector<2x64xf32>, vector<64x128xf32>, vector<2x128xf32> -> vector<2x128xf32>
    %c0_44 = arith.constant 0 : index
    %c0_45 = arith.constant 0 : index
    %60 = vector.load %arg15[%c0_44, %c0_45] : memref<2x1xf32, #tpu.memory_space<vmem>>, vector<2x1xf32>
    %61 = vector.broadcast %60 : vector<2x1xf32> to vector<2x128xf32>
    %62 = arith.addf %59, %61 : vector<2x128xf32>
    %c0_46 = arith.constant 0 : index
    %c0_47 = arith.constant 0 : index
    %63 = vector.load %arg16[%c0_46, %c0_47] : memref<2x128xf32, #tpu.memory_space<vmem>>, vector<2x128xf32>
    tpu.vector_store %arg16[%c0_46, %c0_47], %62 {strides = array<i32>} : memref<2x128xf32, #tpu.memory_space<vmem>>, vector<2x128xf32>,
    return
  }
  func.func @transform_0(%arg0: i32) -> (i32, i32) {
    %c0_i32 = arith.constant 0 : i32
    %c0_i32_0 = arith.constant 0 : i32
    return %c0_i32, %arg0 : i32, i32
  }
  func.func @transform_1(%arg0: i32) -> (i32, i32) {
    %c0_i32 = arith.constant 0 : i32
    %c0_i32_0 = arith.constant 0 : i32
    return %c0_i32, %arg0 : i32, i32
  }
  func.func @transform_2(%arg0: i32) -> (i32, i32) {
    %c0_i32 = arith.constant 0 : i32
    %c0_i32_0 = arith.constant 0 : i32
    %c0_i32_1 = arith.constant 0 : i32
    return %c0_i32, %c0_i32_0 : i32, i32
  }
  func.func @transform_3(%arg0: i32) -> (i32, i32) {
    %c0_i32 = arith.constant 0 : i32
    %c0_i32_0 = arith.constant 0 : i32
    %c0_i32_1 = arith.constant 0 : i32
    return %c0_i32, %c0_i32_0 : i32, i32
  }
  func.func @transform_4(%arg0: i32) -> (i32, i32) {
    %c0_i32 = arith.constant 0 : i32
    %c0_i32_0 = arith.constant 0 : i32
    %c0_i32_1 = arith.constant 0 : i32
    return %c0_i32, %c0_i32_0 : i32, i32
  }
  func.func @transform_5(%arg0: i32) -> (i32, i32) {
    %c0_i32 = arith.constant 0 : i32
    %c0_i32_0 = arith.constant 0 : i32
    %c0_i32_1 = arith.constant 0 : i32
    return %c0_i32, %c0_i32_0 : i32, i32
  }
  func.func @transform_6(%arg0: i32) -> (i32, i32) {
    %c0_i32 = arith.constant 0 : i32
    %c0_i32_0 = arith.constant 0 : i32
    %c0_i32_1 = arith.constant 0 : i32
    return %c0_i32, %c0_i32_0 : i32, i32
  }
  func.func @transform_7(%arg0: i32) -> (i32, i32) {
    %c0_i32 = arith.constant 0 : i32
    %c0_i32_0 = arith.constant 0 : i32
    %c0_i32_1 = arith.constant 0 : i32
    return %c0_i32, %c0_i32_0 : i32, i32
  }
  func.func @transform_8(%arg0: i32) -> (i32, i32) {
    %c0_i32 = arith.constant 0 : i32
    %c0_i32_0 = arith.constant 0 : i32
    %c0_i32_1 = arith.constant 0 : i32
    return %c0_i32, %c0_i32_0 : i32, i32
  }
  func.func @transform_9(%arg0: i32) -> (i32, i32) {
    %c0_i32 = arith.constant 0 : i32
    %c0_i32_0 = arith.constant 0 : i32
    %c0_i32_1 = arith.constant 0 : i32
    return %c0_i32, %c0_i32_0 : i32, i32
  }
  func.func @transform_10(%arg0: i32) -> (i32, i32) {
    %c0_i32 = arith.constant 0 : i32
    %c0_i32_0 = arith.constant 0 : i32
    %c0_i32_1 = arith.constant 0 : i32
    return %c0_i32, %c0_i32_0 : i32, i32
  }
  func.func @transform_11(%arg0: i32) -> (i32, i32) {
    %c0_i32 = arith.constant 0 : i32
    %c0_i32_0 = arith.constant 0 : i32
    %c0_i32_1 = arith.constant 0 : i32
    return %c0_i32, %c0_i32_0 : i32, i32
  }
  func.func @transform_12(%arg0: i32) -> (i32, i32) {
    %c0_i32 = arith.constant 0 : i32
    %c0_i32_0 = arith.constant 0 : i32
    %c0_i32_1 = arith.constant 0 : i32
    return %c0_i32, %c0_i32_0 : i32, i32
  }
  func.func @transform_13(%arg0: i32) -> (i32, i32) {
    %c0_i32 = arith.constant 0 : i32
    %c0_i32_0 = arith.constant 0 : i32
    %c0_i32_1 = arith.constant 0 : i32
    return %c0_i32, %c0_i32_0 : i32, i32
  }
  func.func @transform_14(%arg0: i32) -> (i32, i32) {
    %c0_i32 = arith.constant 0 : i32
    %c0_i32_0 = arith.constant 0 : i32
    %c0_i32_1 = arith.constant 0 : i32
    return %c0_i32, %c0_i32_0 : i32, i32
  }
  func.func @transform_15(%arg0: i32) -> (i32, i32) {
    %c0_i32 = arith.constant 0 : i32
    %c0_i32_0 = arith.constant 0 : i32
    return %c0_i32, %arg0 : i32, i32
  }
}

</mosaic_0001>

<bundles_post_ra>
// kernel: denoising_mlp_forward.1
= control target key start
LH: loop header
LB: loop body
LE: loop exit
PB: predicated region body
PF: predicated region fallthrough
CT: control target
= control target key end

     0   :  { %v2709_v0 = vmov 0   ;;  %v75_v44 = vlaneseq  ;;  %s3726_s3 = inlined_call_operand.vmem [shape: f32[32,1], index: 3, kind: input, shape index: {}]   ;;  %s3727_s2 = inlined_call_operand.vmem [shape: f32[32,1], index: 2, kind: input, shape index: {}]   ;;  %s3728_s4 = inlined_call_operand.vmem [shape: f32[16,1], index: 4, kind: input, shape index: {}]   ;;  %s3729_s6 = inlined_call_operand.vmem [shape: f32[64,1], index: 6, kind: input, shape index: {}]   ;;  %s3730_s8 = inlined_call_operand.vmem [shape: f32[64,1], index: 8, kind: input, shape index: {}]   ;;  %s3731_s10 = inlined_call_operand.vmem [shape: f32[64,1], index: 10, kind: input, shape index: {}]   ;;  %s3732_s12 = inlined_call_operand.vmem [shape: f32[64,1], index: 12, kind: input, shape index: {}]   ;;  %s3733_s14 = inlined_call_operand.vmem [shape: f32[2,1], index: 14, kind: input, shape index: {}]   ;;  %s3734_s0 = inlined_call_operand.vmem [shape: f32[2,128], index: 0, kind: input, shape index: {}]   ;;  %s3735_s1 = inlined_call_operand.vmem [shape: f32[1,128], index: 1, kind: input, shape index: {}]   ;;  %s3736_s5 = inlined_call_operand.vmem [shape: f32[64,96], index: 5, kind: input, shape index: {}]   ;;  %s3737_s7 = inlined_call_operand.vmem [shape: f32[64,64], index: 7, kind: input, shape index: {}]   ;;  %s3738_s9 = inlined_call_operand.vmem [shape: f32[64,64], index: 9, kind: input, shape index: {}]   ;;  %s3739_s11 = inlined_call_operand.vmem [shape: f32[64,64], index: 11, kind: input, shape index: {}]   ;;  %s3740_s13 = inlined_call_operand.vmem [shape: f32[2,64], index: 13, kind: input, shape index: {}]   ;;  %s3741_s15 = inlined_call_operand.vmem [shape: f32[2,128], index: 15, kind: output, shape index: {}]  }
   0x1   :  { %2684 = vset.pattern.permute.xlu1 %v2709_v0  ;;  %2683 = vset.pattern.permute.xlu0 %v2709_v0  ;;  %v83_v1 = vld [vmem:[%s3726_s3] sm:$0xff]  ;;  %v84_v3 = vld [vmem:[%s3726_s3 + $0x8] sm:$0xff]  ;;  %v54_v5 = vld [vmem:[%s3727_s2 + $0x18] sm:$0xff] }
   0x2   :  { %v51_v2 = vld [vmem:[%s3727_s2] sm:$0xff]  ;;  %89 = vperm.xlu1 %2684, %v83_v1   ;;  %v52_v4 = vld [vmem:[%s3727_s2 + $0x8] sm:$0xff]  ;;  %v53_v6 = vld [vmem:[%s3727_s2 + $0x10] sm:$0xff]  ;;  %v76_v45 = vshrl.u32 %v75_v44, 7  ;;  %v3748_v44 = vmov 2131351028  }
   0x3   :  { %57 = vperm.xlu0 %2683, %v51_v2   ;;  %v86_v7 = vld [vmem:[%s3726_s3 + $0x18] sm:$0xff]  ;;  %v85_v8 = vld [vmem:[%s3726_s3 + $0x10] sm:$0xff]  ;;  %v123_v9 = vld [vmem:[%s3728_s4 + $0x8] sm:$0xff] }
   0x4   :  { %v122_v10 = vld [vmem:[%s3728_s4] sm:$0xff]  ;;  %v1417_v11 = vld [vmem:[%s3729_s6 + $0x8] sm:$0xff]  ;;  %v1419_v13 = vld [vmem:[%s3729_s6 + $0x18] sm:$0xff]  ;;  %v109_v48 = vsub.s32 1, %v76_v45  ;;  %v77_v49 = vsub.s32 0, %v76_v45 }
   0x5   :  { %v1416_v12 = vld [vmem:[%s3729_s6] sm:$0xff]  ;;  %v1418_v14 = vld [vmem:[%s3729_s6 + $0x10] sm:$0xff]  ;;  %v1421_v15 = vld [vmem:[%s3729_s6 + $0x28] sm:$0xff] }
   0x6   :  { %94 = vperm.xlu1 %2684, %v84_v3   ;;  %v1420_v16 = vld [vmem:[%s3729_s6 + $0x20] sm:$0xff]  ;;  %v1423_v17 = vld [vmem:[%s3729_s6 + $0x38] sm:$0xff]  ;;  %v1422_v18 = vld [vmem:[%s3729_s6 + $0x30] sm:$0xff] }
   0x7   :  { %62 = vperm.xlu0 %2683, %v52_v4   ;;  %v1611_v19 = vld [vmem:[%s3730_s8 + $0x8] sm:$0xff]  ;;  %v1610_v20 = vld [vmem:[%s3730_s8] sm:$0xff]  ;;  %v1613_v21 = vld [vmem:[%s3730_s8 + $0x18] sm:$0xff] }
   0x8   :  { %v1612_v22 = vld [vmem:[%s3730_s8 + $0x10] sm:$0xff]  ;;  %v1615_v23 = vld [vmem:[%s3730_s8 + $0x28] sm:$0xff]  ;;  %v1614_v24 = vld [vmem:[%s3730_s8 + $0x20] sm:$0xff] }
   0x9   :  { %v1617_v25 = vld [vmem:[%s3730_s8 + $0x38] sm:$0xff]  ;;  %v1616_v26 = vld [vmem:[%s3730_s8 + $0x30] sm:$0xff]  ;;  %v1805_v27 = vld [vmem:[%s3731_s10 + $0x8] sm:$0xff] }
   0xa   :  { %72 = vperm.xlu1 %2684, %v54_v5   ;;  %v1804_v28 = vld [vmem:[%s3731_s10] sm:$0xff]  ;;  %v1807_v29 = vld [vmem:[%s3731_s10 + $0x18] sm:$0xff]  ;;  %v1806_v30 = vld [vmem:[%s3731_s10 + $0x10] sm:$0xff] }
   0xb   :  { %67 = vperm.xlu0 %2683, %v53_v6   ;;  %v1809_v31 = vld [vmem:[%s3731_s10 + $0x28] sm:$0xff]  ;;  %v1808_v32 = vld [vmem:[%s3731_s10 + $0x20] sm:$0xff]  ;;  %v1811_v33 = vld [vmem:[%s3731_s10 + $0x38] sm:$0xff] }
   0xc   :  { %v1810_v34 = vld [vmem:[%s3731_s10 + $0x30] sm:$0xff]  ;;  %v1998_v35 = vld [vmem:[%s3732_s12 + $0x8] sm:$0xff]  ;;  %v1997_v36 = vld [vmem:[%s3732_s12] sm:$0xff] }
   0xd   :  { %v2000_v37 = vld [vmem:[%s3732_s12 + $0x18] sm:$0xff]  ;;  %v1999_v38 = vld [vmem:[%s3732_s12 + $0x10] sm:$0xff]  ;;  %v2002_v39 = vld [vmem:[%s3732_s12 + $0x28] sm:$0xff] }
   0xe   :  { %104 = vperm.xlu1 %2684, %v86_v7   ;;  %v2001_v40 = vld [vmem:[%s3732_s12 + $0x20] sm:$0xff]  ;;  %v2004_v41 = vld [vmem:[%s3732_s12 + $0x38] sm:$0xff]  ;;  %v2003_v42 = vld [vmem:[%s3732_s12 + $0x30] sm:$0xff] }
   0xf   :  { %99 = vperm.xlu0 %2683, %v85_v8   ;;  %v2183_v43 = vld [vmem:[%s3733_s14] sm:$0x3] }
  0x10   :  { %v50_v50 = vld [vmem:[%s3734_s0] sm:$0x3] }
  0x11   :  { %v110_v53 = vrot.slane %v50_v50, %v109_v48  ;;  %v78_v54 = vrot.slane %v50_v50, %v77_v49  ;;  %v119_v61 = vld [vmem:[%s3735_s1] sm:$0x1]  ;;  %v2714_v48 = vmov 920167782  }
  0x12   :  { %131 = vperm.xlu1 %2684, %v123_v9   ;;  %v120_v5 = vmul.f32 0.02, %v119_v61 }
  0x13   :  { %126 = vperm.xlu0 %2683, %v122_v10  }
  0x16   :  { %1431 = vperm.xlu1 %2684, %v1417_v11  }
  0x17   :  { %1426 = vperm.xlu0 %2683, %v1416_v12   ;;  %v2267_v12 = vadd.f32 -0.5, %v120_v5 }
  0x1a   :  { %1441 = vperm.xlu1 %2684, %v1419_v13  }
  0x1b   :  { %1436 = vperm.xlu0 %2683, %v1418_v14  }
  0x1e   :  { %1451 = vperm.xlu1 %2684, %v1421_v15  }
  0x1f   :  { %1446 = vperm.xlu0 %2683, %v1420_v16  }
  0x22   :  { %1461 = vperm.xlu1 %2684, %v1423_v17  }
  0x23   :  { %1456 = vperm.xlu0 %2683, %v1422_v18  }
  0x26   :  { %1625 = vperm.xlu1 %2684, %v1611_v19   ;;  %v2949_v19 = vrot.slane %v2267_v12, %v77_v49 }
  0x27   :  { %1620 = vperm.xlu0 %2683, %v1610_v20  }
  0x2a   :  { %1635 = vperm.xlu1 %2684, %v1613_v21  }
  0x2b   :  { %1630 = vperm.xlu0 %2683, %v1612_v22  }
  0x2e   :  { %1645 = vperm.xlu1 %2684, %v1615_v23  }
  0x2f   :  { %1640 = vperm.xlu0 %2683, %v1614_v24  }
  0x32   :  { %1655 = vperm.xlu1 %2684, %v1617_v25  }
  0x33   :  { %1650 = vperm.xlu0 %2683, %v1616_v26  }
  0x36   :  { %1819 = vperm.xlu1 %2684, %v1805_v27  }
  0x37   :  { %1814 = vperm.xlu0 %2683, %v1804_v28  }
  0x3a   :  { %1829 = vperm.xlu1 %2684, %v1807_v29  }
  0x3b   :  { %1824 = vperm.xlu0 %2683, %v1806_v30  }
  0x3e   :  { %1839 = vperm.xlu1 %2684, %v1809_v31  }
  0x3f   :  { %1834 = vperm.xlu0 %2683, %v1808_v32  }
  0x42   :  { %1849 = vperm.xlu1 %2684, %v1811_v33  }
  0x43   :  { %1844 = vperm.xlu0 %2683, %v1810_v34  }
  0x46   :  { %2012 = vperm.xlu1 %2684, %v1998_v35  }
  0x47   :  { %2007 = vperm.xlu0 %2683, %v1997_v36  }
  0x4a   :  { %2022 = vperm.xlu1 %2684, %v2000_v37  }
  0x4b   :  { %2017 = vperm.xlu0 %2683, %v1999_v38  }
  0x4e   :  { %2032 = vperm.xlu1 %2684, %v2002_v39   ;;  %v2710_v39 = vmov 683565275  }
  0x4f   :  { %2027 = vperm.xlu0 %2683, %v2001_v40  }
  0x52   :  { %2042 = vperm.xlu1 %2684, %v2004_v41   ;;  %v3752_v41 = vmov 2475754826  }
  0x53   :  { %2037 = vperm.xlu0 %2683, %v2003_v42  }
  0x57   :  { %2186 = vperm.xlu0 %2683, %v2183_v43  }
  0x81   :  { %v90_v46 = vpop.permute.xlu1 %89 }
  0x82   :  { %v58_v47 = vpop.permute.xlu0 %57  ;;  %v111_v57 = vmul.f32 %v110_v53, %v90_v46  ;;  %v2713_v46 = vmov 2102212464  }
  0x83   :  { %v79_v58 = vmul.f32 %v78_v54, %v58_v47 }
  0x85   :  { %v95_v51 = vpop.permute.xlu1 %94  ;;  %v2934_v62 = vadd.f32 %v111_v57, %v79_v58 }
  0x86   :  { %v63_v52 = vpop.permute.xlu0 %62  ;;  %v112_v1 = vmul.f32 %v110_v53, %v95_v51 }
  0x87   :  { %v80_v2 = vmul.f32 %v78_v54, %v63_v52  ;;  %v145_v7 = vand.u32 2139095040, %v2934_v62 }
  0x89   :  { %v73_v55 = vpop.permute.xlu1 %72  ;;  %v2939_v8 = vadd.f32 %v112_v1, %v80_v2  ;;  %v146_v14 = vshrl.u32 %v145_v7, 23 }
  0x8a   :  { %v68_v56 = vpop.permute.xlu0 %67  ;;  %v82_v63 = vmul.f32 %v78_v54, %v73_v55  ;;  %v2715_v55 = vmov 1326507024  }
  0x8b   :  { %v81_v6 = vmul.f32 %v78_v54, %v68_v56  ;;  %v249_v15 = vand.u32 2139095040, %v2939_v8  ;;  %v2268_v22 = vadd.s32 4294967169, %v146_v14 }
  0x8d   :  { %v105_v59 = vpop.permute.xlu1 %104  ;;  %v250_v24 = vshrl.u32 %v249_v15, 23  ;;  %v2957_v31 = vadd.s32 1, %v2268_v22 }
  0x8e   :  { %v100_v60 = vpop.permute.xlu0 %99  ;;  %v114_v0 = vmul.f32 %v110_v53, %v105_v59 }
  0x8f   :  { %v113_v3 = vmul.f32 %v110_v53, %v100_v60  ;;  %v2272_v34 = vadd.s32 4294967169, %v250_v24  ;;  %vm153_vm7 = vcmp.gt.s32.totalorder %v2957_v31, 0 }
  0x90   :  { %v2936_v4 = vadd.f32 %v114_v0, %v82_v63 }
  0x91   :  { %v2943_v11 = vadd.f32 %v113_v3, %v81_v6  ;;  %v132_v21 = vpop.permute.xlu1 %131 }
  0x92   :  { %v3747_v9 = vand.u32 2147483647, %v2936_v4  ;;  %v457_v10 = vand.u32 2139095040, %v2936_v4  ;;  %v2955_v28 = vmul.f32 %v2949_v19, %v132_v21 }
  0x93   :  { %v3746_v17 = vand.u32 2147483647, %v2943_v11  ;;  %v353_v20 = vand.u32 2139095040, %v2943_v11 }
  0x94   :  { %v458_v13 = vshrl.u32 %v457_v10, 23  ;;  %v461_v16 = vand.u32 8388607, %v3747_v9  ;;  %v1085_v43 = vand.u32 2139095040, %v2955_v28  ;;  %v3744_v21 = vand.u32 2147483647, %v2955_v28 }
  0x95   :  { %v354_v26 = vshrl.u32 %v353_v20, 23  ;;  %v357_v27 = vand.u32 8388607, %v3746_v17 }
  0x96   :  { %v2280_v18 = vadd.s32 4294967169, %v458_v13  ;;  %v462_v25 = vor.u32 8388608, %v461_v16  ;;  %v256_v16 = vadd.s32 1, %v2272_v34 }
  0x97   :  { %v2276_v30 = vadd.s32 4294967169, %v354_v26  ;;  %v358_v36 = vor.u32 8388608, %v357_v27 }
  0x98   :  { %v464_v23 = vadd.s32 1, %v2280_v18  ;;  %v2959_v35 = vshll.u32 %v462_v25, 8  ;;  %vm257_vm8 = vcmp.gt.s32.totalorder %v256_v16, 0 }
  0x99   :  { %v360_v37 = vadd.s32 1, %v2276_v30  ;;  %v1086_v30 = vshrl.u32 %v1085_v43, 23 }
  0x9a   :  { %vm465_vm0 = vcmp.gt.s32.totalorder %v464_v23, 0 }
  0x9b   :  { %v466_v29 = vsel %vm465_vm0, %v464_v23, 0  ;;  %vm361_vm4 = vcmp.gt.s32.totalorder %v360_v37, 0 }
  0x9c   :  { %v467_v32 = vshrl.u32 %v466_v29, 5  ;;  %v468_v33 = vand.u32 31, %v466_v29  ;;  %v362_v63 = vsel %vm361_vm4, %v360_v37, 0  ;;  %v2995_v29 = vshll.u32 %v358_v36, 8 }
  0x9d   :  { %v2977_v10 = vshrl.u32 %v362_v63, 5  ;;  %v364_v15 = vand.u32 31, %v362_v63 }
  0x9e   :  { %v469_v38 = vsub.s32 32, %v468_v33  ;;  %v471_v40 = vshll.u32 %v2710_v39, %v468_v33  ;;  %v474_v42 = vshll.u32 %v3752_v41, %v468_v33  ;;  %v477_v45 = vshll.u32 %v3748_v44, %v468_v33 }
  0x9f   :  { %v480_v47 = vshll.u32 %v2713_v46, %v468_v33  ;;  %v483_v49 = vshll.u32 %v2714_v48, %v468_v33  ;;  %vm486_vm1 = vcmp.lt.s32.totalorder %v467_v32, 1  ;;  %vm487_vm2 = vcmp.lt.s32.totalorder %v467_v32, 2 }
  0xa0   :  { %v472_v50 = vshrl.u32 %v3752_v41, %v469_v38  ;;  %v475_v51 = vshrl.u32 %v3748_v44, %v469_v38  ;;  %v478_v52 = vshrl.u32 %v2713_v46, %v469_v38  ;;  %v470_v53 = vshrl.u32 %v2710_v39, %v469_v38 }
  0xa1   :  { %v481_v54 = vshrl.u32 %v2714_v48, %v469_v38  ;;  %v484_v56 = vshrl.u32 %v2715_v55, %v469_v38  ;;  %vm488_vm3 = vcmp.lt.s32.totalorder %v467_v32, 3  ;;  %vm489_vm5 = vcmp.lt.s32.totalorder %v467_v32, 4 }
  0xa2   :  { %v473_v57 = vor.u32 %v472_v50, %v471_v40  ;;  %v476_v58 = vor.u32 %v475_v51, %v474_v42  ;;  %v479_v59 = vor.u32 %v478_v52, %v477_v45  ;;  %v365_v27 = vsub.s32 32, %v364_v15 }
  0xa3   :  { %v482_v60 = vor.u32 %v481_v54, %v480_v47  ;;  %v485_v61 = vor.u32 %v484_v56, %v483_v49  ;;  %v367_v32 = vshll.u32 %v2710_v39, %v364_v15  ;;  %v370_v33 = vshll.u32 %v3752_v41, %v364_v15 }
  0xa4   :  { %v490_v0 = vsel %vm486_vm1, %v470_v53, %v473_v57  ;;  %v491_v1 = vsel %vm489_vm5, %v479_v59, 2102212464  ;;  %v494_v2 = vsel %vm486_vm1, %v473_v57, %v476_v58  ;;  %v498_v3 = vsel %vm486_vm1, %v476_v58, %v479_v59 }
  0xa5   :  { %v492_v5 = vsel %vm488_vm3, %v476_v58, %v491_v1  ;;  %v495_v6 = vsel %vm489_vm5, %v482_v60, 920167782  ;;  %v499_v7 = vsel %vm489_vm5, %v485_v61, 1326507024  ;;  %v373_v34 = vshll.u32 %v3748_v44, %v364_v15 }
  0xa6   :  { %v493_v12 = vsel %vm487_vm2, %v490_v0, %v492_v5  ;;  %v496_v13 = vsel %vm488_vm3, %v479_v59, %v495_v6  ;;  %v500_v14 = vsel %vm488_vm3, %v482_v60, %v499_v7  ;;  %vm382_vm6 = vcmp.lt.s32.totalorder %v2977_v10, 1 }
  0xa7   :  { %v497_v18 = vsel %vm487_vm2, %v494_v2, %v496_v13  ;;  %v501_v20 = vsel %vm487_vm2, %v498_v3, %v500_v14  ;;  %v509_v26 = vmul.u32 %v2959_v35, %v493_v12  ;;  %v368_v37 = vshrl.u32 %v3752_v41, %v365_v27 }
  0xa8   :  { %v2986_v22 = vmul.u32.u64.low %v2959_v35, %v501_v20  ;;  %v2987_v23 = vmul.u32.u64.high %v2959_v35, %v501_v20, %v2986_v22  ;;  %v2990_v24 = vmul.u32.u64.low %v2959_v35, %v497_v18  ;;  %v2991_v25 = vmul.u32.u64.high %v2959_v35, %v497_v18, %v2990_v24 }
  0xa9   :  { %v371_v38 = vshrl.u32 %v3748_v44, %v365_v27  ;;  %v374_v35 = vshrl.u32 %v2713_v46, %v365_v27  ;;  %v376_v36 = vshll.u32 %v2713_v46, %v364_v15  ;;  %v377_v42 = vshrl.u32 %v2714_v48, %v365_v27  ;;  %v127_v22 = vpop.permute.xlu0 %126 }
  0xaa   :  { %vm511_vm9 = vc.u32 %v2987_v23, %v2990_v24  ;;  %v512_v40 = vadd.s32 1, %v2991_v25  ;;  %v379_v43 = vshll.u32 %v2714_v48, %v364_v15  ;;  %v369_v45 = vor.u32 %v368_v37, %v367_v32 }
  0xab   :  { %v372_v47 = vor.u32 %v371_v38, %v370_v33  ;;  %v375_v49 = vor.u32 %v374_v35, %v373_v34  ;;  %v380_v50 = vshrl.u32 %v2715_v55, %v365_v27  ;;  %v378_v52 = vor.u32 %v377_v42, %v376_v36 }
  0xac   :  { %v513_v51 = vsel %vm511_vm9, %v512_v40, %v2991_v25  ;;  %vm384_vm10 = vcmp.lt.s32.totalorder %v2977_v10, 3  ;;  %vm385_vm11 = vcmp.lt.s32.totalorder %v2977_v10, 4  ;;  %v366_v54 = vshrl.u32 %v2710_v39, %v365_v27 }
  0xad   :  { %v514_v53 = vadd.s32 %v513_v51, %v509_v26  ;;  %v381_v56 = vor.u32 %v380_v50, %v379_v43  ;;  %v387_v57 = vsel %vm385_vm11, %v375_v49, 2102212464  ;;  %v390_v58 = vsel %vm382_vm6, %v369_v45, %v372_v47 }
  0xae   :  { %v391_v59 = vsel %vm385_vm11, %v378_v52, 920167782  ;;  %v394_v60 = vsel %vm382_vm6, %v372_v47, %v375_v49  ;;  %v2304_v61 = vadd.s32 4294967169, %v1086_v30  ;;  %vm383_vm12 = vcmp.lt.s32.totalorder %v2977_v10, 2 }
  0xaf   :  { %v515_v63 = vadd.s32 536870912, %v514_v53  ;;  %v392_v0 = vsel %vm384_vm10, %v375_v49, %v391_v59  ;;  %v395_v1 = vsel %vm385_vm11, %v381_v56, 1326507024  ;;  %v386_v2 = vsel %vm382_vm6, %v366_v54, %v369_v45 }
  0xb0   :  { %v388_v3 = vsel %vm384_vm10, %v372_v47, %v387_v57  ;;  %v393_v5 = vsel %vm383_vm12, %v390_v58, %v392_v0  ;;  %v396_v6 = vsel %vm384_vm10, %v378_v52, %v395_v1  ;;  %v1092_v20 = vadd.s32 1, %v2304_v61 }
  0xb1   :  { %v3029_v7 = vshrl.u32 %v515_v63, 30  ;;  %v397_v12 = vsel %vm383_vm12, %v394_v60, %v396_v6  ;;  %v3032_v13 = vmul.u32.u64.low %v2995_v29, %v393_v5  ;;  %v3033_v14 = vmul.u32.u64.high %v2995_v29, %v393_v5, %v3032_v13 }
  0xb2   :  { %v3037_v15 = vmul.u32.u64.low %v2995_v29, %v397_v12  ;;  %v3038_v18 = vmul.u32.u64.high %v2995_v29, %v397_v12, %v3037_v15  ;;  %v389_v26 = vsel %vm383_vm12, %v386_v2, %v388_v3  ;;  %v3745_v10 = vand.u32 2147483647, %v2934_v62 }
  0xb3   :  { %v517_v25 = vshll.u32 %v3029_v7, 30  ;;  %v3743_v27 = vand.u32 2147483647, %v2939_v8  ;;  %v3046_v30 = vsel %vm153_vm7, %v2957_v31, 0  ;;  %v3049_v32 = vsel %vm257_vm8, %v256_v16, 0 }
  0xb4   :  { %v1089_v33 = vand.u32 8388607, %v3744_v21  ;;  %vm1093_vm13 = vcmp.gt.s32.totalorder %v1092_v20, 0  ;;  %v408_v37 = vadd.s32 1, %v3033_v14  ;;  %v3057_v35 = vmul.f32 %v2949_v19, %v127_v22 }
  0xb5   :  { %v3053_v34 = vsub.s32 %v514_v53, %v517_v25  ;;  %v1094_v38 = vsel %vm1093_vm13, %v1092_v20, 0  ;;  %v405_v36 = vmul.u32 %v2995_v29, %v389_v26  ;;  %vm407_vm14 = vc.u32 %v3038_v18, %v3032_v13 }
  0xb6   :  { %v1096_v31 = vand.u32 31, %v1094_v38  ;;  %v3063_v16 = vand.u32 31, %v3046_v30  ;;  %v409_v40 = vsel %vm407_vm14, %v408_v37, %v3033_v14  ;;  %v3068_v42 = vand.u32 8388607, %v3745_v10 }
  0xb7   :  { %v3072_v43 = vand.u32 8388607, %v3743_v27  ;;  %v3075_v19 = vand.u32 31, %v3049_v32  ;;  %v3077_v29 = vadd.s32 %v409_v40, %v405_v36  ;;  %v1090_v45 = vor.u32 8388608, %v1089_v33 }
  0xb8   :  { %v1097_v47 = vsub.s32 32, %v1096_v31  ;;  %v520_v49 = vsub.s32 0, %v3053_v34  ;;  %v1095_v50 = vshrl.u32 %v1094_v38, 5  ;;  %v1099_v51 = vshll.u32 %v2710_v39, %v1096_v31 }
  0xb9   :  { %v981_v52 = vand.u32 2139095040, %v3057_v35  ;;  %v1102_v54 = vshll.u32 %v3752_v41, %v1096_v31  ;;  %v1105_v57 = vshll.u32 %v3748_v44, %v1096_v31  ;;  %v1108_v59 = vshll.u32 %v2713_v46, %v1096_v31 }
  0xba   :  { %v1100_v53 = vshrl.u32 %v3752_v41, %v1097_v47  ;;  %v1103_v56 = vshrl.u32 %v3748_v44, %v1097_v47  ;;  %v1106_v58 = vshrl.u32 %v2713_v46, %v1097_v47  ;;  %v1109_v60 = vshrl.u32 %v2714_v48, %v1097_v47 }
  0xbb   :  { %v1112_v61 = vshrl.u32 %v2715_v55, %v1097_v47  ;;  %v411_v63 = vadd.s32 536870912, %v3077_v29  ;;  %v1111_v2 = vshll.u32 %v2714_v48, %v1096_v31  ;;  %v2281_v3 = vmin.u32 %v520_v49, %v3053_v34 }
  0xbc   :  { %v1101_v0 = vor.u32 %v1100_v53, %v1099_v51  ;;  %v1104_v1 = vor.u32 %v1103_v56, %v1102_v54  ;;  %v1107_v5 = vor.u32 %v1106_v58, %v1105_v57  ;;  %v1110_v6 = vor.u32 %v1109_v60, %v1108_v59 }
  0xbd   :  { %v982_v12 = vshrl.u32 %v981_v52, 23  ;;  %v3094_v14 = vsub.s32 32, %v3063_v16  ;;  %v1113_v15 = vor.u32 %v1112_v61, %v1111_v2  ;;  %v150_v20 = vor.u32 8388608, %v3068_v42 }
  0xbe   :  { %v254_v22 = vor.u32 8388608, %v3072_v43  ;;  %v3099_v25 = vsub.s32 32, %v3075_v19  ;;  %vm1114_vm15 = vcmp.lt.s32.totalorder %v1095_v50, 1  ;;  %vm1117_vm0 = vcmp.lt.s32.totalorder %v1095_v50, 4 }
  0xbf   :  { %v1130_v26 = vshll.u32 %v1090_v45, 8  ;;  %v3101_v33 = vshrl.u32 %v411_v63, 30  ;;  %v1119_v37 = vsel %vm1117_vm0, %v1107_v5, 2102212464  ;;  %v1122_v38 = vsel %vm1114_vm15, %v1101_v0, %v1104_v1 }
  0xc0   :  { %v1123_v36 = vsel %vm1117_vm0, %v1110_v6, 920167782  ;;  %v522_v31 = vclz %v2281_v3  ;;  %v1098_v40 = vshrl.u32 %v2710_v39, %v1097_v47  ;;  %vm1116_vm1 = vcmp.lt.s32.totalorder %v1095_v50, 3 }
  0xc1   :  { %v2300_v49 = vadd.s32 4294967169, %v982_v12  ;;  %vm1115_vm2 = vcmp.lt.s32.totalorder %v1095_v50, 2  ;;  %v1124_v42 = vsel %vm1116_vm1, %v1107_v5, %v1123_v36  ;;  %v1126_v51 = vsel %vm1114_vm15, %v1104_v1, %v1107_v5 }
  0xc2   :  { %v1127_v43 = vsel %vm1117_vm0, %v1113_v15, 1326507024  ;;  %v1118_v52 = vsel %vm1114_vm15, %v1098_v40, %v1101_v0  ;;  %v1120_v53 = vsel %vm1116_vm1, %v1104_v1, %v1119_v37  ;;  %v1125_v54 = vsel %vm1115_vm2, %v1122_v38, %v1124_v42 }
  0xc3   :  { %v1128_v56 = vsel %vm1116_vm1, %v1110_v6, %v1127_v43  ;;  %v413_v45 = vshll.u32 %v3101_v33, 30  ;;  %v3107_v58 = vmul.u32.u64.low %v1130_v26, %v1125_v54  ;;  %v3108_v59 = vmul.u32.u64.high %v1130_v26, %v1125_v54, %v3107_v58 }
  0xc4   :  { %v1129_v57 = vsel %vm1115_vm2, %v1126_v51, %v1128_v56  ;;  %v3112_v47 = vshrl.u32 %v3046_v30, 5  ;;  %v168_v60 = vshll.u32 %v2713_v46, %v3063_v16  ;;  %v169_v0 = vshrl.u32 %v2714_v48, %v3094_v14 }
  0xc5   :  { %v3116_v61 = vmul.u32.u64.low %v1130_v26, %v1129_v57  ;;  %v3117_v63 = vmul.u32.u64.high %v1130_v26, %v1129_v57, %v3116_v61  ;;  %v172_v1 = vshrl.u32 %v2715_v55, %v3094_v14  ;;  %v1121_v2 = vsel %vm1115_vm2, %v1118_v52, %v1120_v53 }
  0xc6   :  { %v988_v3 = vadd.s32 1, %v2300_v49  ;;  %v171_v5 = vshll.u32 %v2714_v48, %v3063_v16  ;;  %v3127_v30 = vshrl.u32 %v3049_v32, 5  ;;  %v273_v6 = vshrl.u32 %v2714_v48, %v3099_v25 }
  0xc7   :  { %v3742_v12 = vand.u32 2147483647, %v3057_v35  ;;  %v2282_v15 = vadd.s32 4294967294, %v522_v31  ;;  %v3133_v37 = vsub.s32 %v3077_v29, %v413_v45  ;;  %v1140_v38 = vadd.s32 1, %v3108_v59 }
  0xc8   :  { %vm989_vm3 = vcmp.gt.s32.totalorder %v988_v3, 0  ;;  %v272_v50 = vshll.u32 %v2713_v46, %v3075_v19  ;;  %v1137_v36 = vmul.u32 %v1130_v26, %v1121_v2  ;;  %vm1139_vm4 = vc.u32 %v3117_v63, %v3107_v58 }
  0xc9   :  { %v990_v32 = vsel %vm989_vm3, %v988_v3, 0  ;;  %v3140_v40 = vor.u32 %v169_v0, %v168_v60  ;;  %v173_v49 = vor.u32 %v172_v1, %v171_v5  ;;  %v1141_v42 = vsel %vm1139_vm4, %v1140_v38, %v3108_v59 }
  0xca   :  { %v992_v31 = vand.u32 31, %v990_v32  ;;  %v3143_v51 = vor.u32 %v273_v6, %v272_v50  ;;  %v3147_v29 = vshrl.u32 %v2715_v55, %v3099_v25  ;;  %v1142_v43 = vadd.s32 %v1141_v42, %v1137_v36 }
  0xcb   :  { %v3149_v52 = vshll.u32 %v150_v20, 8  ;;  %vm2283_vm5 = vcmp.lt.s32.totalorder %v2282_v15, 0  ;;  %v416_v26 = vsub.s32 0, %v3133_v37  ;;  %v985_v53 = vand.u32 8388607, %v3742_v12 }
  0xcc   :  { %v993_v54 = vsub.s32 32, %v992_v31  ;;  %vm177_vm6 = vcmp.lt.s32.totalorder %v3112_v47, 4  ;;  %v275_v56 = vshll.u32 %v2714_v48, %v3075_v19  ;;  %v1143_v45 = vadd.s32 536870912, %v1142_v43 }
  0xcd   :  { %v3157_v57 = vshll.u32 %v254_v22, 8  ;;  %v3162_v20 = vsel %vm177_vm6, %v3140_v40, 920167782  ;;  %v3166_v59 = vsel %vm177_vm6, %v173_v49, 1326507024  ;;  %vm281_vm7 = vcmp.lt.s32.totalorder %v3127_v30, 4 }
  0xce   :  { %v996_v60 = vshrl.u32 %v3752_v41, %v993_v54  ;;  %v277_v61 = vor.u32 %v3147_v29, %v275_v56  ;;  %v3171_v0 = vsel %vm2283_vm5, 0, %v2282_v15  ;;  %v3173_v1 = vshrl.u32 %v1143_v45, 30 }
  0xcf   :  { %v999_v22 = vshrl.u32 %v3748_v44, %v993_v54  ;;  %v3179_v2 = vsel %vm281_vm7, %v3143_v51, 920167782  ;;  %v2277_v3 = vmin.u32 %v416_v26, %v3133_v37  ;;  %v986_v5 = vor.u32 8388608, %v985_v53 }
  0xd0   :  { %3755 = vst [vmem:[#allocation3_spill] sm:$0xff] %v3173_v1  ;;  %v995_v6 = vshll.u32 %v2710_v39, %v992_v31  ;;  %v998_v38 = vshll.u32 %v3752_v41, %v992_v31  ;;  %v1001_v50 = vshll.u32 %v3748_v44, %v992_v31  ;;  %v1002_v15 = vshrl.u32 %v2713_v46, %v993_v54 }
  0xd1   :  { %v159_v36 = vshll.u32 %v2710_v39, %v3063_v16  ;;  %v530_v49 = vsub.s32 4294967266, %v3171_v0  ;;  %v1145_v42 = vshll.u32 %v3173_v1, 30  ;;  %v991_v29 = vshrl.u32 %v990_v32, 5 }
  0xd2   :  { %v997_v56 = vor.u32 %v996_v60, %v995_v6  ;;  %v1000_v45 = vor.u32 %v999_v22, %v998_v38  ;;  %v1003_v26 = vor.u32 %v1002_v15, %v1001_v50  ;;  %v1004_v53 = vshll.u32 %v2713_v46, %v992_v31 }
  0xd3   :  { %v1005_v12 = vshrl.u32 %v2714_v48, %v993_v54  ;;  %v418_v27 = vclz %v2277_v3  ;;  %v1007_v21 = vshll.u32 %v2714_v48, %v992_v31  ;;  %v1008_v10 = vshrl.u32 %v2715_v55, %v993_v54 }
  0xd4   :  { %v1026_v17 = vshll.u32 %v986_v5, 8  ;;  %v994_v9 = vshrl.u32 %v2710_v39, %v993_v54  ;;  %v160_v1 = vshrl.u32 %v3752_v41, %v3094_v14  ;;  %v162_v32 = vshll.u32 %v3752_v41, %v3063_v16 }
  0xd5   :  { %v1006_v44 = vor.u32 %v1005_v12, %v1004_v53  ;;  %v3199_v60 = vsub.s32 %v1142_v43, %v1145_v42  ;;  %v1009_v22 = vor.u32 %v1008_v10, %v1007_v21  ;;  %vm1010_vm8 = vcmp.lt.s32.totalorder %v991_v29, 1 }
  0xd6   :  { %vm1013_vm9 = vcmp.lt.s32.totalorder %v991_v29, 4  ;;  %vm1012_vm10 = vcmp.lt.s32.totalorder %v991_v29, 3  ;;  %v1018_v48 = vsel %vm1010_vm8, %v997_v56, %v1000_v45  ;;  %vm1011_vm11 = vcmp.lt.s32.totalorder %v991_v29, 2 }
  0xd7   :  { %v1015_v3 = vsel %vm1013_vm9, %v1003_v26, 2102212464  ;;  %v1019_v31 = vsel %vm1013_vm9, %v1006_v44, 920167782  ;;  %v1022_v5 = vsel %vm1010_vm8, %v1000_v45, %v1003_v26  ;;  %v3756_v12 = vmov 2131351028  }
  0xd8   :  { %v1020_v55 = vsel %vm1012_vm10, %v1003_v26, %v1019_v31  ;;  %v163_v54 = vshrl.u32 %v3756_v12, %v3094_v14  ;;  %v2278_v6 = vadd.s32 4294967294, %v418_v27  ;;  %v1014_v38 = vsel %vm1010_vm8, %v994_v9, %v997_v56 }
  0xd9   :  { %v1021_v50 = vsel %vm1011_vm11, %v1018_v48, %v1020_v55  ;;  %v1023_v15 = vsel %vm1013_vm9, %v1009_v22, 1326507024  ;;  %v1016_v43 = vsel %vm1012_vm10, %v1000_v45, %v1015_v3  ;;  %v3210_v53 = vsel %vm281_vm7, %v277_v61, 1326507024 }
  0xda   :  { %v1024_v42 = vsel %vm1012_vm10, %v1006_v44, %v1023_v15  ;;  %v3204_v21 = vmul.u32.u64.low %v1026_v17, %v1021_v50  ;;  %v3205_v10 = vmul.u32.u64.high %v1026_v17, %v1021_v50, %v3204_v21  ;;  %v531_v31 = vadd.s32 127, %v530_v49 }
  0xdb   :  { %v1148_v26 = vsub.s32 0, %v3199_v60  ;;  %v1025_v41 = vsel %vm1011_vm11, %v1022_v5, %v1024_v42  ;;  %v161_v56 = vor.u32 %v160_v1, %v159_v36  ;;  %v164_v22 = vor.u32 %v163_v54, %v162_v32 }
  0xdc   :  { %v3214_v27 = vmul.u32.u64.low %v1026_v17, %v1025_v41  ;;  %v3215_v9 = vmul.u32.u64.high %v1026_v17, %v1025_v41, %v3214_v27  ;;  %v510_v44 = vadd.s32 %v2990_v24, %v2987_v23  ;;  %v1017_v45 = vsel %vm1011_vm11, %v1014_v38, %v1016_v43 }
  0xdd   :  { %v165_v3 = vshll.u32 %v3756_v12, %v3063_v16  ;;  %v166_v61 = vshrl.u32 %v2713_v46, %v3094_v14  ;;  %v3226_v49 = vadd.s32 %v3032_v13, %v3038_v18  ;;  %vm2279_vm12 = vcmp.lt.s32.totalorder %v2278_v6, 0 }
  0xde   :  { %v1036_v41 = vadd.s32 1, %v3205_v10  ;;  %v158_v1 = vshrl.u32 %v2710_v39, %v3094_v14  ;;  %v526_v23 = vsub.s32 32, %v3171_v0  ;;  %v2305_v24 = vmin.u32 %v1148_v26, %v3199_v60 }
  0xdf   :  { %v167_v36 = vor.u32 %v166_v61, %v165_v3  ;;  %vm174_vm13 = vcmp.lt.s32.totalorder %v3112_v47, 1  ;;  %v532_v16 = vshll.u32 %v531_v31, 23  ;;  %v1033_v29 = vmul.u32 %v1026_v17, %v1017_v45 }
  0xe0   :  { %vm1035_vm14 = vc.u32 %v3215_v9, %v3204_v21  ;;  %v182_v13 = vsel %vm174_vm13, %v161_v56, %v164_v22  ;;  %v3236_v18 = vsel %vm2279_vm12, 0, %v2278_v6  ;;  %vm176_vm15 = vcmp.lt.s32.totalorder %v3112_v47, 3 }
  0xe1   :  { %v1037_v32 = vsel %vm1035_vm14, %v1036_v41, %v3205_v10  ;;  %v179_v14 = vsel %vm177_vm6, %v167_v36, 2102212464  ;;  %vm175_vm0 = vcmp.lt.s32.totalorder %v3112_v47, 2  ;;  %v184_v55 = vsel %vm176_vm15, %v167_v36, %v3162_v20 }
  0xe2   :  { %v1038_v48 = vadd.s32 %v1037_v32, %v1033_v29  ;;  %v186_v5 = vsel %vm174_vm13, %v164_v22, %v167_v36  ;;  %v1150_v17 = vclz %v2305_v24  ;;  %v178_v54 = vsel %vm174_vm13, %v158_v1, %v161_v56 }
  0xe3   :  { %v180_v38 = vsel %vm176_vm15, %v164_v22, %v179_v14  ;;  %v185_v6 = vsel %vm175_vm0, %v182_v13, %v184_v55  ;;  %v188_v15 = vsel %vm176_vm15, %v3140_v40, %v3166_v59  ;;  %v527_v10 = vshll.u32 %v3053_v34, %v3171_v0 }
  0xe4   :  { %v1039_v50 = vadd.s32 536870912, %v1038_v48  ;;  %v3249_v43 = vmul.u32.u64.low %v3149_v52, %v185_v6  ;;  %v3250_v42 = vmul.u32.u64.high %v3149_v52, %v185_v6, %v3249_v43  ;;  %v528_v20 = vshrl.u32 %v510_v44, %v526_v23 }
  0xe5   :  { %v426_v31 = vsub.s32 4294967266, %v3236_v18  ;;  %v189_v26 = vsel %vm175_vm0, %v186_v5, %v188_v15  ;;  %v3258_v27 = vor.u32 4788187, %v532_v16  ;;  %v2306_v22 = vadd.s32 4294967294, %v1150_v17 }
  0xe6   :  { %v3260_v56 = vshrl.u32 %v1039_v50, 30  ;;  %v3263_v40 = vmul.u32.u64.low %v3149_v52, %v189_v26  ;;  %v3264_v59 = vmul.u32.u64.high %v3149_v52, %v189_v26, %v3263_v40  ;;  %v181_v45 = vsel %vm175_vm0, %v178_v54, %v180_v38 }
  0xe7   :  { %v263_v34 = vshll.u32 %v2710_v39, %v3075_v19  ;;  %v3757_v0 = vmov 2475754826   ;;  %v200_v61 = vadd.s32 1, %v3250_v42  ;;  %v267_v1 = vshrl.u32 %v3756_v12, %v3099_v25 }
  0xe8   :  { %v264_v44 = vshrl.u32 %v3757_v0, %v3099_v25  ;;  %v1041_v3 = vshll.u32 %v3260_v56, 30  ;;  %v266_v41 = vshll.u32 %v3757_v0, %v3075_v19  ;;  %v427_v23 = vadd.s32 127, %v426_v31 }
  0xe9   :  { %v269_v47 = vshll.u32 %v3756_v12, %v3075_v19  ;;  %v270_v36 = vshrl.u32 %v2713_v46, %v3099_v25  ;;  %v197_v29 = vmul.u32 %v3149_v52, %v181_v45  ;;  %vm199_vm1 = vc.u32 %v3264_v59, %v3249_v43 }
  0xea   :  { %v265_v24 = vor.u32 %v264_v44, %v263_v34  ;;  %v3282_v16 = vsub.s32 %v1038_v48, %v1041_v3  ;;  %v268_v13 = vor.u32 %v267_v1, %v266_v41  ;;  %v422_v32 = vsub.s32 32, %v3236_v18 }
  0xeb   :  { %vm2307_vm2 = vcmp.lt.s32.totalorder %v2306_v22, 0  ;;  %v201_v14 = vsel %vm199_vm1, %v200_v61, %v3250_v42  ;;  %v271_v55 = vor.u32 %v270_v36, %v269_v47  ;;  %vm278_vm3 = vcmp.lt.s32.totalorder %v3127_v30, 1 }
  0xec   :  { %v1044_v5 = vsub.s32 0, %v3282_v16  ;;  %v202_v19 = vadd.s32 %v201_v14, %v197_v29  ;;  %vm280_vm4 = vcmp.lt.s32.totalorder %v3127_v30, 3  ;;  %v428_v46 = vshll.u32 %v427_v23, 23 }
  0xed   :  { %v262_v52 = vshrl.u32 %v2710_v39, %v3099_v25  ;;  %v286_v12 = vsel %vm278_vm3, %v265_v24, %v268_v13  ;;  %v288_v48 = vsel %vm280_vm4, %v271_v55, %v3179_v2  ;;  %vm279_vm5 = vcmp.lt.s32.totalorder %v3127_v30, 2 }
  0xee   :  { %v2301_v17 = vmin.u32 %v1044_v5, %v3282_v16  ;;  %v203_v54 = vadd.s32 536870912, %v202_v19  ;;  %v283_v38 = vsel %vm281_vm7, %v271_v55, 2102212464  ;;  %v424_v6 = vshrl.u32 %v3226_v49, %v422_v32 }
  0xef   :  { %v1153_v50 = vsel %vm2307_vm2, 0, %v2306_v22  ;;  %v289_v39 = vsel %vm279_vm5, %v286_v12, %v288_v48  ;;  %v290_v25 = vsel %vm278_vm3, %v268_v13, %v271_v55  ;;  %v282_v42 = vsel %vm278_vm3, %v262_v52, %v265_v24 }
  0xf0   :  { %v1046_v15 = vclz %v2301_v17  ;;  %v3309_v2 = vshrl.u32 %v203_v54, 30  ;;  %v292_v31 = vsel %vm280_vm4, %v3143_v51, %v3210_v53  ;;  %v284_v49 = vsel %vm280_vm4, %v268_v13, %v283_v38 }
  0xf1   :  { %v293_v26 = vsel %vm279_vm5, %v290_v25, %v292_v31  ;;  %v3322_v40 = vmul.u32.u64.low %v3157_v57, %v289_v39  ;;  %v3323_v22 = vmul.u32.u64.high %v3157_v57, %v289_v39, %v3322_v40  ;;  %v423_v45 = vshll.u32 %v3133_v37, %v3236_v18 }
  0xf2   :  { %v429_v34 = vor.u32 4788187, %v428_v46  ;;  %v2302_v0 = vadd.s32 4294967294, %v1046_v15  ;;  %v205_v44 = vshll.u32 %v3309_v2, 30  ;;  %v529_v3 = vor.u32 %v528_v20, %v527_v10 }
  0xf3   :  { %v1158_v51 = vsub.s32 4294967266, %v1153_v50  ;;  %v3330_v53 = vmul.u32.u64.low %v3157_v57, %v293_v26  ;;  %v3331_v61 = vmul.u32.u64.high %v3157_v57, %v293_v26, %v3330_v53  ;;  %v425_v41 = vor.u32 %v424_v6, %v423_v45 }
  0xf4   :  { %vm2303_vm6 = vcmp.lt.s32.totalorder %v2302_v0, 0  ;;  %v206_v1 = vsub.s32 %v202_v19, %v205_v44  ;;  %v285_v23 = vsel %vm279_vm5, %v282_v42, %v284_v49  ;;  %v304_v24 = vadd.s32 1, %v3323_v22 }
  0xf5   :  { %v534_v37 = vand.u32 2147483647, %v3258_v27  ;;  %v430_v18 = vand.u32 2147483647, %v429_v34  ;;  %v1159_v36 = vadd.s32 127, %v1158_v51  ;;  %v1049_v29 = vsel %vm2303_vm6, 0, %v2302_v0 }
  0xf6   :  { %v208_v47 = vsub.s32 0, %v206_v1  ;;  %v301_v10 = vmul.u32 %v3157_v57, %v285_v23  ;;  %vm303_vm7 = vc.u32 %v3331_v61, %v3322_v40  ;;  %v536_v20 = vcvt.s32.f32 %v529_v3 }
  0xf7   :  { %v432_v13 = vcvt.s32.f32 %v425_v41  ;;  %v305_v14 = vsel %vm303_vm7, %v304_v24, %v3323_v22  ;;  %v1154_v30 = vsub.s32 32, %v1153_v50  ;;  %v1054_v46 = vsub.s32 4294967266, %v1049_v29 }
  0xf8   :  { %v2269_v32 = vmin.u32 %v208_v47, %v206_v1  ;;  %v306_v55 = vadd.s32 %v305_v14, %v301_v10  ;;  %v537_v5 = vmul.f32 %v536_v20, %v534_v37  ;;  %v1138_v52 = vadd.s32 %v3107_v58, %v3117_v63 }
  0xf9   :  { %v433_v19 = vmul.f32 %v432_v13, %v430_v18  ;;  %v1160_v12 = vshll.u32 %v1159_v36, 23  ;;  %v1055_v39 = vadd.s32 127, %v1054_v46  ;;  %v1155_v25 = vshll.u32 %v3199_v60, %v1153_v50 }
  0xfa   :  { %v210_v27 = vclz %v2269_v32  ;;  %v307_v48 = vadd.s32 536870912, %v306_v55  ;;  %v1156_v17 = vshrl.u32 %v1138_v52, %v1154_v30  ;;  %v538_v38 = vxor.u32 2147483648, %v537_v5 }
  0xfb   :  { %v434_v6 = vxor.u32 2147483648, %v433_v19  ;;  %v1161_v15 = vor.u32 4788187, %v1160_v12  ;;  %v1050_v49 = vsub.s32 32, %v1049_v29  ;;  %v198_v58 = vadd.s32 %v3249_v43, %v3264_v59 }
  0xfc   :  { %v2270_v57 = vadd.s32 4294967294, %v210_v27  ;;  %v3343_v54 = vshrl.u32 %v307_v48, 30  ;;  %vm456_vm9 = vcmp.lt.s32.totalorder %v2936_v4, 0  ;;  %v1157_v22 = vor.u32 %v1156_v17, %v1155_v25 }
  0xfd   :  { %v1034_v45 = vadd.s32 %v3204_v21, %v3215_v9  ;;  %v1056_v0 = vshll.u32 %v1055_v39, 23  ;;  %v539_v3 = vsel %vm456_vm9, %v538_v38, %v537_v5  ;;  %vm352_vm10 = vcmp.lt.s32.totalorder %v2943_v11, 0 }
  0xfe   :  { %vm2271_vm8 = vcmp.lt.s32.totalorder %v2270_v57, 0  ;;  %v309_v31 = vshll.u32 %v3343_v54, 30  ;;  %v1162_v51 = vand.u32 2147483647, %v1161_v15  ;;  %v435_v59 = vsel %vm352_vm10, %v434_v6, %v433_v19 }
  0xff   :  { %v213_v42 = vsel %vm2271_vm8, 0, %v2270_v57  ;;  %v1052_v53 = vshrl.u32 %v1034_v45, %v1050_v49  ;;  %v3758_v21 = vand.u32 2147483647, %v2936_v4  ;;  %v1164_v37 = vcvt.s32.f32 %v1157_v22 }
 0x100   :  { %v214_v63 = vsub.s32 32, %v213_v42  ;;  %v218_v26 = vsub.s32 4294967266, %v213_v42  ;;  %v310_v34 = vsub.s32 %v306_v55, %v309_v31  ;;  %v215_v44 = vshll.u32 %v206_v1, %v213_v42 }
 0x101   :  { %vm3359_vm11 = vcmp.le.f32.partialorder %v3758_v21, 0.7853982  ;;  %v3761_v1 = vand.u32 2147483647, %v2943_v11  ;;  %v1051_v36 = vshll.u32 %v3282_v16, %v1049_v29  ;;  %v1057_v10 = vor.u32 4788187, %v1056_v0 }
 0x102   :  { %v216_v60 = vshrl.u32 %v198_v58, %v214_v63  ;;  %v219_v50 = vadd.s32 127, %v218_v26  ;;  %v312_v43 = vsub.s32 0, %v310_v34  ;;  %v542_v47 = vsel %vm3359_vm11, %v2936_v4, %v539_v3 }
 0x103   :  { %vm3365_vm12 = vcmp.le.f32.partialorder %v3761_v1, 0.7853982  ;;  %v1165_v32 = vmul.f32 %v1164_v37, %v1162_v51  ;;  %v1053_v30 = vor.u32 %v1052_v53, %v1051_v36  ;;  %v436_v19 = vsub.s32 4, %v3101_v33 }
 0x104   :  { %v217_v41 = vor.u32 %v216_v60, %v215_v44  ;;  %v220_v23 = vshll.u32 %v219_v50, 23  ;;  %v2273_v18 = vmin.u32 %v312_v43, %v310_v34  ;;  %v438_v13 = vsel %vm3365_vm12, %v2943_v11, %v435_v59 }
 0x105   :  { %2685 = vcosq.f32 %v542_v47  ;;  %v1058_v27 = vand.u32 2147483647, %v1057_v10  ;;  %v1166_v16 = vxor.u32 2147483648, %v1165_v32  ;;  %v1060_v29 = vcvt.s32.f32 %v1053_v30 }
 0x106   :  { %v221_v20 = vor.u32 4788187, %v220_v23  ;;  %v314_v14 = vclz %v2273_v18  ;;  %v224_v5 = vcvt.s32.f32 %v217_v41  ;;  %2687 = vcosq.f32 %v438_v13 }
 0x107   :  { %2689 = vsinq.f32 %v438_v13  ;;  %v437_v57 = vsel %vm352_vm10, %v436_v19, %v3101_v33  ;;  %v302_v17 = vadd.s32 %v3322_v40, %v3331_v61  ;;  %v540_v39 = vsub.s32 4, %v3029_v7 }
 0x108   :  { %v222_v55 = vand.u32 2147483647, %v221_v20  ;;  %v2274_v46 = vadd.s32 4294967294, %v314_v14  ;;  %2691 = vsinq.f32 %v542_v47  ;;  %v1061_v25 = vmul.f32 %v1060_v29, %v1058_v27  ;;  %v1396_v20 = vld [vmem:[%s3736_s5] sm:$0xff] }
 0x109   :  { %vm144_vm14 = vcmp.lt.s32.totalorder %v2934_v62, 0  ;;  %v228_v15 = vsub.s32 4, %v3309_v2  ;;  %vm1084_vm15 = vcmp.lt.s32.totalorder %v2955_v28, 0  ;;  %v3764_v33 = vand.u32 2147483647, %v2934_v62 }
 0x10a   :  { %v225_v52 = vmul.f32 %v224_v5, %v222_v55  ;;  %vm2275_vm13 = vcmp.lt.s32.totalorder %v2274_v46, 0  ;;  %v3394_v61 = vsel %vm3365_vm12, 0, %v437_v57  ;;  %v1167_v63 = vsel %vm1084_vm15, %v1166_v16, %v1165_v32 }
 0x10b   :  { %v317_v48 = vsel %vm2275_vm13, 0, %v2274_v46  ;;  %vm3388_vm0 = vcmp.le.f32.partialorder %v3764_v33, 0.7853982  ;;  %v541_v45 = vsel %vm456_vm9, %v540_v39, %v3029_v7  ;;  %v229_v0 = vsel %vm144_vm14, %v228_v15, %v3309_v2 }
 0x10c   :  { %v226_v12 = vxor.u32 2147483648, %v225_v52  ;;  %v318_v38 = vsub.s32 32, %v317_v48  ;;  %v322_v6 = vsub.s32 4294967266, %v317_v48  ;;  %v319_v31 = vshll.u32 %v310_v34, %v317_v48 }
 0x10d   :  { %v1062_v34 = vxor.u32 2147483648, %v1061_v25  ;;  %v332_v60 = vsub.s32 4, %v3343_v54  ;;  %v3767_v3 = vand.u32 2147483647, %v2955_v28  ;;  %v443_v7 = vadd.s32 3, %v3394_v61 }
 0x10e   :  { %v227_v42 = vsel %vm144_vm14, %v226_v12, %v225_v52  ;;  %v320_v49 = vshrl.u32 %v302_v17, %v318_v38  ;;  %v323_v58 = vadd.s32 127, %v322_v6  ;;  %vm980_vm2 = vcmp.lt.s32.totalorder %v3057_v35, 0 }
 0x10f   :  { %v230_v44 = vsel %vm3388_vm0, %v2934_v62, %v227_v42  ;;  %v3406_v50 = vpop.eup %2685  ;;  %vm3410_vm1 = vcmp.le.f32.partialorder %v3767_v3, 0.7853982  ;;  %vm248_vm3 = vcmp.lt.s32.totalorder %v2939_v8, 0  ;;  %v3424_v53 = vsel %vm3359_vm11, 0, %v541_v45 }
 0x110   :  { %v321_v26 = vor.u32 %v320_v49, %v319_v31  ;;  %v324_v22 = vshll.u32 %v323_v58, 23  ;;  %v3415_v59 = vpop.eup %2687  ;;  %v1170_v2 = vsel %vm3410_vm1, %v2955_v28, %v1167_v63  ;;  %v231_v23 = vsel %vm3388_vm0, 0, %v229_v0 }
 0x111   :  { %v3426_v41 = vpop.eup %2689  ;;  %2693 = vcosq.f32 %v230_v44  ;;  %v1063_v24 = vsel %vm980_vm2, %v1062_v34, %v1061_v25  ;;  %v333_v37 = vsel %vm248_vm3, %v332_v60, %v3343_v54  ;;  %v3770_v9 = vand.u32 2147483647, %v2939_v8  ;;  %v3776_v25 = vld [vmem:[#allocation3_spill] sm:$0xff] }
 0x112   :  { %v325_v43 = vor.u32 4788187, %v324_v22  ;;  %v328_v1 = vcvt.s32.f32 %v321_v26  ;;  %2695 = vsinq.f32 %v230_v44  ;;  %v444_v36 = vand.u32 3, %v443_v7  ;;  %v3445_v13 = vpop.eup %2691 }
 0x113   :  { %vm3437_vm4 = vcmp.le.f32.partialorder %v3770_v9, 0.7853982  ;;  %v547_v10 = vadd.s32 3, %v3424_v53  ;;  %2697 = vcosq.f32 %v1170_v2  ;;  %v3773_v32 = vand.u32 2147483647, %v3057_v35 }
 0x114   :  { %v326_v21 = vand.u32 2147483647, %v325_v43  ;;  %v235_v14 = vadd.s32 3, %v231_v23  ;;  %v447_v30 = vxor.u32 2147483648, %v3426_v41  ;;  %v335_v19 = vsel %vm3437_vm4, 0, %v333_v37 }
 0x115   :  { %vm3449_vm5 = vcmp.le.f32.partialorder %v3773_v32, 0.7853982  ;;  %vm3754_vm6 = vcmask 785408   ;;  %2699 = vsinq.f32 %v1170_v2  ;;  %v3459_v46 = vand.u32 3, %v231_v23 }
 0x116   :  { %v329_v47 = vmul.f32 %v328_v1, %v326_v21  ;;  %v1066_v55 = vsel %vm3449_vm5, %v3057_v35, %v1063_v24  ;;  %v450_v27 = vxor.u32 2147483648, %v3415_v59  ;;  %2450 = vmatprep.mubr.msk.f32.mxu0 %vm3754_vm6, %v1396_v20  ;;  %vm446_vm7 = vcmp.eq.s32.totalorder %v444_v36, 0 }
 0x117   :  { %v548_v16 = vand.u32 3, %v547_v10  ;;  %v551_v29 = vxor.u32 2147483648, %v3445_v13  ;;  %2701 = vsinq.f32 %v1066_v55  ;;  %v339_v48 = vadd.s32 3, %v335_v19 }
 0x118   :  { %v330_v5 = vxor.u32 2147483648, %v329_v47  ;;  %vm442_vm8 = vweird.f32 %v2943_v11  ;;  %v554_v57 = vxor.u32 2147483648, %v3406_v50  ;;  %v3471_v17 = vand.u32 3, %v235_v14 }
 0x119   :  { %v448_v38 = vsel %vm446_vm7, %v3415_v59, %v447_v30  ;;  %vm449_vm9 = vcmp.eq.s32.totalorder %v444_v36, 2  ;;  %v1064_v39 = vsub.s32 4, %v3260_v56  ;;  %v1168_v15 = vsub.s32 4, %v3776_v25 }
 0x11a   :  { %v331_v52 = vsel %vm248_vm3, %v330_v5, %v329_v47  ;;  %v451_v6 = vsel %vm449_vm9, %v450_v27, %v3426_v41  ;;  %v3483_v31 = vand.u32 3, %v335_v19  ;;  %vm550_vm10 = vcmp.eq.s32.totalorder %v548_v16, 0 }
 0x11b   :  { %v334_v12 = vsel %vm3437_vm4, %v2939_v8, %v331_v52  ;;  %v3481_v42 = vpop.eup %2693  ;;  %vm553_vm11 = vcmp.eq.s32.totalorder %v548_v16, 2  ;;  %v340_v58 = vand.u32 3, %v339_v48  ;;  %vm445_vm12 = vcmp.lt.s32.totalorder %v444_v36, 2 }
 0x11c   :  { %2703 = vcosq.f32 %v334_v12  ;;  %v3485_v49 = vpop.eup %2695  ;;  %v552_v33 = vsel %vm550_vm10, %v3406_v50, %v551_v29  ;;  %v555_v40 = vsel %vm553_vm11, %v554_v57, %v3445_v13  ;;  %vm238_vm14 = vcmp.eq.s32.totalorder %v3471_v17, 0 }
 0x11d   :  { %2705 = vsinq.f32 %v334_v12  ;;  %vm241_vm0 = vcmp.eq.s32.totalorder %v3471_v17, 2  ;;  %v452_v63 = vsel %vm445_vm12, %v448_v38, %v451_v6  ;;  %vm546_vm3 = vweird.f32 %v2936_v4  ;;  %v3497_v26 = vpop.eup %2697 }
 0x11e   :  { %2707 = vcosq.f32 %v1066_v55  ;;  %vm549_vm4 = vcmp.lt.s32.totalorder %v548_v16, 2  ;;  %v3500_v22 = vand.u32 3, %v3394_v61  ;;  %v1065_v45 = vsel %vm980_vm2, %v1064_v39, %v3260_v56 }
 0x11f   :  { %v1169_v34 = vsel %vm1084_vm15, %v1168_v15, %v3776_v25  ;;  %v239_v0 = vxor.u32 2147483648, %v3485_v49  ;;  %v242_v44 = vxor.u32 2147483648, %v3481_v42  ;;  %v556_v60 = vsel %vm549_vm4, %v552_v33, %v555_v40  ;;  %v3511_v3 = vpop.eup %2699 }
 0x120   :  { %vm234_vm9 = vweird.f32 %v2934_v62  ;;  %vm338_vm10 = vweird.f32 %v2939_v8  ;;  %vm341_vm11 = vcmp.lt.s32.totalorder %v340_v58, 2  ;;  %vm342_vm12 = vcmp.eq.s32.totalorder %v340_v58, 0 }
 0x121   :  { %vm345_vm2 = vcmp.eq.s32.totalorder %v340_v58, 2  ;;  %vm657_vm6 = vcmp.eq.s32.totalorder %v3459_v46, 0  ;;  %v964_v56 = vand.u32 3, %v3424_v53  ;;  %vm763_vm7 = vcmp.eq.s32.totalorder %v3483_v31, 2  ;;  %v3526_v2 = vpop.eup %2701 }
 0x122   :  { %v453_v61 = vsel %vm442_vm8, nan, %v452_v63  ;;  %v1067_v43 = vsel %vm3449_vm5, 0, %v1065_v45  ;;  %v1171_v7 = vsel %vm3410_vm1, 0, %v1169_v34  ;;  %v557_v23 = vsel %vm546_vm3, nan, %v556_v60 }
 0x123   :  { %vm862_vm4 = vcmp.lt.s32.totalorder %v3500_v22, 2  ;;  %vm863_vm13 = vcmp.eq.s32.totalorder %v3500_v22, 0  ;;  %vm866_vm15 = vcmp.eq.s32.totalorder %v3500_v22, 2  ;;  %v240_v21 = vsel %vm238_vm14, %v3481_v42, %v239_v0 }
 0x124   :  { %v243_v51 = vsel %vm241_vm0, %v242_v44, %v3485_v49  ;;  %v865_v1 = vsel %vm863_vm13, %v3415_v59, %v447_v30  ;;  %v868_v24 = vsel %vm866_vm15, %v450_v27, %v3426_v41  ;;  %vm965_vm1 = vcmp.lt.s32.totalorder %v964_v56, 2 }
 0x125   :  { %v1071_v18 = vadd.s32 3, %v1067_v43  ;;  %v1175_v47 = vadd.s32 3, %v1171_v7  ;;  %v2569_v20 = vpack.c.bf16 %v557_v23, %v453_v61  ;;  %vm966_vm5 = vcmp.eq.s32.totalorder %v964_v56, 0 }
 0x126   :  { %v2704_v53 = vpop.eup %2703  ;;  %vm969_vm14 = vcmp.eq.s32.totalorder %v964_v56, 2  ;;  %vm3777_vm0 = vcmp.lt.s32.totalorder %v3471_v17, 2  ;;  %v968_v59 = vsel %vm966_vm5, %v3406_v50, %v551_v29  ;;  %vm3778_vm13 = vcmp.eq.s32.totalorder %v3483_v31, 0 }
 0x127   :  { %v2706_v37 = vpop.eup %2705  ;;  %v346_v9 = vxor.u32 2147483648, %v2704_v53  ;;  %v244_v32 = vsel %vm3777_vm0, %v240_v21, %v243_v51  ;;  %v971_v41 = vsel %vm969_vm14, %v554_v57, %v3445_v13  ;;  %v1075_v5 = vxor.u32 2147483648, %v3526_v2  ;;  %v1401_v21 = vld [vmem:[%s3736_s5 + $0x28] sm:$0xff]  ;;  %v1402_v51 = vld [vmem:[%s3736_s5 + $0x30] sm:$0xff] }
 0x128   :  { %v2708_v36 = vpop.eup %2707  ;;  %v343_v10 = vxor.u32 2147483648, %v2706_v37  ;;  %v1072_v27 = vand.u32 3, %v1071_v18  ;;  %v1176_v16 = vand.u32 3, %v1175_v47  ;;  %v245_v29 = vsel %vm234_vm9, nan, %v244_v32 }
 0x129   :  { %v347_v54 = vsel %vm345_vm2, %v346_v9, %v2706_v37  ;;  %v765_v55 = vsel %vm763_vm7, %v346_v9, %v2706_v37  ;;  %v1078_v52 = vxor.u32 2147483648, %v2708_v36  ;;  %v659_v13 = vsel %vm657_vm6, %v3481_v42, %v239_v0  ;;  %v1432_v37 = vpop.permute.xlu1 %1431  ;;  %v1427_v9 = vpop.permute.xlu0 %1426 }
 0x12a   :  { %v344_v14 = vsel %vm342_vm12, %v2704_v53, %v343_v10  ;;  %v762_v30 = vsel %vm3778_vm13, %v2704_v53, %v343_v10  ;;  %vm3779_vm7 = vcmp.eq.s32.totalorder %v3459_v46, 2  ;;  %vm3780_vm12 = vcmp.lt.s32.totalorder %v3483_v31, 2  ;;  %v1400_v53 = vld [vmem:[%s3736_s5 + $0x20] sm:$0xff] }
 0x12b   :  { %v348_v19 = vsel %vm341_vm11, %v344_v14, %v347_v54  ;;  %v662_v12 = vsel %vm3779_vm7, %v242_v44, %v3485_v49  ;;  %v766_v48 = vsel %vm3780_vm12, %v762_v30, %v765_v55  ;;  %v1179_v17 = vxor.u32 2147483648, %v3511_v3 }
 0x12c   :  { %v349_v50 = vsel %vm338_vm10, nan, %v348_v19  ;;  %v1182_v38 = vxor.u32 2147483648, %v3497_v26  ;;  %vm656_vm11 = vcmp.lt.s32.totalorder %v3459_v46, 2  ;;  %v869_v6 = vsel %vm862_vm4, %v865_v1, %v868_v24  ;;  %v1403_v1 = vld [vmem:[%s3736_s5 + $0x38] sm:$0xff]  ;;  %v1602_v24 = vld [vmem:[%s3737_s7] sm:$0xff] }
 0x12d   :  { %v2565_v57 = vpack.c.bf16 %v349_v50, %v245_v29  ;;  %v972_v39 = vsel %vm965_vm1, %v968_v59, %v971_v41  ;;  %v663_v25 = vsel %vm656_vm11, %v659_v13, %v662_v12  ;;  %vm1074_vm6 = vcmp.eq.s32.totalorder %v1072_v27, 0  ;;  %v1442_v18 = vpop.permute.xlu1 %1441 }
 0x12e   :  { %vm1077_vm2 = vcmp.eq.s32.totalorder %v1072_v27, 2  ;;  %v1281_v15 = vand.u32 3, %v1067_v43  ;;  %v767_v42 = vsel %vm338_vm10, nan, %v766_v48  ;;  %v1076_v31 = vsel %vm1074_vm6, %v2708_v36, %v1075_v5 }
 0x12f   :  { %2566 = vmatprep.subr.bf16.mxu0 %v2565_v57  ;;  %vm1178_vm15 = vcmp.eq.s32.totalorder %v1176_v16, 0  ;;  %vm1181_vm5 = vcmp.eq.s32.totalorder %v1176_v16, 2  ;;  %v1079_v46 = vsel %vm1077_vm2, %v1078_v52, %v3526_v2  ;;  %v1384_v33 = vand.u32 3, %v1171_v7 }
 0x130   :  { %2568 = vmatpush3.bf16.msra.mxu0 %v2565_v57  ;;  %v1180_v49 = vsel %vm1178_vm15, %v3497_v26, %v1179_v17  ;;  %v1183_v58 = vsel %vm1181_vm5, %v1182_v38, %v3511_v3  ;;  %v664_v40 = vsel %vm234_vm9, nan, %v663_v25  ;;  %vm1073_vm4 = vcmp.lt.s32.totalorder %v1072_v27, 2 }
 0x131   :  { %2570 = vmatprep.subr.bf16.mxu0 %v2569_v20  ;;  %v2573_v63 = vpack.c.bf16 %v767_v42, %v664_v40  ;;  %vm1177_vm1 = vcmp.lt.s32.totalorder %v1176_v16, 2  ;;  %v870_v8 = vsel %vm442_vm8, nan, %v869_v6  ;;  %v973_v22 = vsel %vm546_vm3, nan, %v972_v39  ;;  %v1452_v55 = vpop.permute.xlu1 %1451  ;;  %v1604_v40 = vld [vmem:[%s3737_s7 + $0x10] sm:$0xff] }
 0x132   :  { %v1080_v45 = vsel %vm1073_vm4, %v1076_v31, %v1079_v46  ;;  %v1184_v34 = vsel %vm1177_vm1, %v1180_v49, %v1183_v58  ;;  %vm1283_vm10 = vcmp.eq.s32.totalorder %v1281_v15, 0  ;;  %vm1286_vm14 = vcmp.eq.s32.totalorder %v1281_v15, 2 }
 0x133   :  { %vm1386_vm0 = vcmp.eq.s32.totalorder %v1384_v33, 0  ;;  %vm1389_vm13 = vcmp.eq.s32.totalorder %v1384_v33, 2  ;;  %v1285_v0 = vsel %vm1283_vm10, %v2708_v36, %v1075_v5  ;;  %v1288_v62 = vsel %vm1286_vm14, %v1078_v52, %v3526_v2  ;;  %v1437_v36 = vpop.permute.xlu0 %1436 }
 0x134   :  { %2572 = vmatpush3.bf16.msra.mxu0 %v2569_v20  ;;  %v1388_v44 = vsel %vm1386_vm0, %v3497_v26, %v1179_v17  ;;  %v1391_v60 = vsel %vm1389_vm13, %v1182_v38, %v3511_v3  ;;  %v2577_v56 = vpack.c.bf16 %v973_v22, %v870_v8  ;;  %vm1070_vm8 = vweird.f32 %v3057_v35  ;;  %v1398_v35 = vld [vmem:[%s3736_s5 + $0x10] sm:$0xff]  ;;  %v1399_v3 = vld [vmem:[%s3736_s5 + $0x18] sm:$0xff]  ;;  %v1606_v8 = vld [vmem:[%s3737_s7 + $0x20] sm:$0xff] }
 0x135   :  { %2574 = vmatprep.subr.bf16.mxu0 %v2573_v63  ;;  %vm1174_vm9 = vweird.f32 %v2955_v28  ;;  %v1081_v4 = vsel %vm1070_vm8, nan, %v1080_v45  ;;  %vm1282_vm3 = vcmp.lt.s32.totalorder %v1281_v15, 2  ;;  %vm1385_vm7 = vcmp.lt.s32.totalorder %v1384_v33, 2  ;;  %v1397_v28 = vld [vmem:[%s3736_s5 + $0x8] sm:$0xff]  ;;  %v1462_v17 = vpop.permute.xlu1 %1461  ;;  %v1608_v45 = vld [vmem:[%s3737_s7 + $0x30] sm:$0xff] }
 0x136   :  { %v1185_v11 = vsel %vm1174_vm9, nan, %v1184_v34  ;;  %v1289_v61 = vsel %vm1282_vm3, %v1285_v0, %v1288_v62  ;;  %v1392_v43 = vsel %vm1385_vm7, %v1388_v44, %v1391_v60  ;;  %vm3781_vm12 = vcmask 785408   ;;  %v1603_v33 = vld [vmem:[%s3737_s7 + $0x8] sm:$0xff]  ;;  %v1609_v34 = vld [vmem:[%s3737_s7 + $0x38] sm:$0xff]  ;;  %v1796_v0 = vld [vmem:[%s3738_s9] sm:$0xff] }
 0x137   :  { %v2581_v7 = vpack.c.bf16 %v1185_v11, %v1081_v4  ;;  %v1290_v2 = vsel %vm1070_vm8, nan, %v1289_v61  ;;  %v1393_v23 = vsel %vm1174_vm9, nan, %v1392_v43  ;;  %vm3782_vm11 = vmmov %vm3781_vm12  ;;  %vm1658_vm1 = vcmask 523264   ;;  %v1447_v27 = vpop.permute.xlu0 %1446  ;;  %v1607_v22 = vld [vmem:[%s3737_s7 + $0x28] sm:$0xff] }
 0x138   :  { %2576 = vmatpush3.bf16.msra.mxu0 %v2573_v63  ;;  %v2585_v26 = vpack.c.bf16 %v1393_v23, %v1290_v2  ;;  %vm3783_vm6 = vmmov %vm3782_vm11  ;;  %2478 = vmatprep.mubr.msk.f32.mxu1 %vm1658_vm1, %v1602_v24  ;;  %v1605_v63 = vld [vmem:[%s3737_s7 + $0x18] sm:$0xff]  ;;  %vm2717_vm10 = vmmov 0  }
 0x139   :  { %2578 = vmatprep.subr.bf16.mxu0 %v2577_v56  ;;  %vm3784_vm2 = vmmov %vm3783_vm6  ;;  %v1626_v62 = vpop.permute.xlu1 %1625 }
 0x13a   :  { %vm3785_vm15 = vmmov %vm3784_vm2 }
 0x13b   :  { %vm3786_vm5 = vmmov %vm3784_vm2  ;;  %v1457_v39 = vpop.permute.xlu0 %1456 }
 0x13c   :  { %2580 = vmatpush3.bf16.msra.mxu0 %v2577_v56  ;;  %vm3787_vm4 = vmmov %vm3784_vm2 }
 0x13d   :  { %2582 = vmatprep.subr.bf16.mxu0 %v2581_v7  ;;  %v1636_v60 = vpop.permute.xlu1 %1635 }
 0x13f   :  { %v1621_v44 = vpop.permute.xlu0 %1620 }
 0x140   :  { %2584 = vmatpush3.bf16.msra.mxu0 %v2581_v7 }
 0x141   :  { %2586 = vmatprep.subr.bf16.mxu0 %v2585_v26 }
 0x143   :  { %v1631_v4 = vpop.permute.xlu0 %1630 }
 0x144   :  { %2588 = vmatpush3.bf16.msra.mxu0 %v2585_v26 }
 0x147   :  { %2451 = vmatmul.mubr.msk.f32.vlgmr.msra.gmra.mrb[0].mxu0 %vm3781_vm12, %v1397_v28 }
 0x148   :  { %2453 = vmatprep.mubr.msk.f32.mxu0 %vm3782_vm11, %v1398_v35  ;;  %v1646_v35 = vpop.permute.xlu1 %1645 }
 0x14b   :  { %2454 = vmatmul.mubr.msk.f32.gmra.mrb[2].mxu0 %vm3783_vm6, %v1399_v3 }
 0x14c   :  { %2456 = vmatprep.mubr.msk.f32.mxu0 %vm3784_vm2, %v1400_v53 }
 0x14f   :  { %2457 = vmatmul.mubr.msk.f32.gmra.mrb[4].mxu0 %vm3785_vm15, %v1401_v21  ;;  %v1641_v21 = vpop.permute.xlu0 %1640 }
 0x150   :  { %2459 = vmatprep.mubr.msk.f32.mxu0 %vm3786_vm5, %v1402_v51 }
 0x153   :  { %2460 = vmatmul.mubr.msk.f32.gmra.mrb[6].mxu0 %vm3787_vm4, %v1403_v1 }
 0x21a   :  { %v2452_v47 = vpop.f32.mrb[0].mxu0 }
 0x21b   :  { %v1561_v10 = vadd.f32 %v2452_v47, %v1432_v37  ;;  %v1555_v20 = vpop.f32.mrb[1].mxu0 }
 0x21c   :  { %v1556_v32 = vadd.f32 %v1555_v20, %v1427_v9 }
 0x21d   :  { %v1595_v54 = vmax.f32 %v1561_v10, 0.0  ;;  %v1656_v10 = vpop.permute.xlu1 %1655 }
 0x21e   :  { %v1594_v59 = vmax.f32 %v1556_v32, 0.0  ;;  %v2455_v41 = vpop.f32.mrb[2].mxu0 }
 0x21f   :  { %v1571_v14 = vadd.f32 %v2455_v41, %v1442_v18  ;;  %v1565_v30 = vpop.f32.mrb[3].mxu0 }
 0x220   :  { %v1566_v5 = vadd.f32 %v1565_v30, %v1437_v36  ;;  %v2589_v19 = vpack.c.bf16 %v1595_v54, %v1594_v59  ;;  %v1651_v54 = vpop.permute.xlu0 %1650 }
 0x221   :  { %v1597_v52 = vmax.f32 %v1571_v14, 0.0 }
 0x222   :  { %v1596_v16 = vmax.f32 %v1566_v5, 0.0  ;;  %v2458_v29 = vpop.f32.mrb[4].mxu0  ;;  %2590 = vmatprep.subr.bf16.mxu1 %v2589_v19 }
 0x223   :  { %v1581_v50 = vadd.f32 %v2458_v29, %v1452_v55  ;;  %v1575_v13 = vpop.f32.mrb[5].mxu0  ;;  %2592 = vmatpush3.bf16.msra.mxu1 %v2589_v19  ;;  %v1800_v29 = vld [vmem:[%s3738_s9 + $0x20] sm:$0xff] }
 0x224   :  { %v2593_v12 = vpack.c.bf16 %v1597_v52, %v1596_v16  ;;  %v1576_v48 = vadd.f32 %v1575_v13, %v1447_v27  ;;  %v1797_v27 = vld [vmem:[%s3738_s9 + $0x8] sm:$0xff]  ;;  %v1798_v52 = vld [vmem:[%s3738_s9 + $0x10] sm:$0xff]  ;;  %v1799_v16 = vld [vmem:[%s3738_s9 + $0x18] sm:$0xff] }
 0x225   :  { %v1599_v57 = vmax.f32 %v1581_v50, 0.0  ;;  %v1801_v50 = vld [vmem:[%s3738_s9 + $0x28] sm:$0xff]  ;;  %v1802_v13 = vld [vmem:[%s3738_s9 + $0x30] sm:$0xff] }
 0x226   :  { %v1598_v38 = vmax.f32 %v1576_v48, 0.0  ;;  %v2461_v6 = vpop.f32.mrb[6].mxu0  ;;  %2594 = vmatprep.subr.bf16.mxu1 %v2593_v12  ;;  %v1989_v48 = vld [vmem:[%s3739_s11] sm:$0xff] }
 0x227   :  { %v1591_v25 = vadd.f32 %v2461_v6, %v1462_v17  ;;  %v1585_v15 = vpop.f32.mrb[7].mxu0  ;;  %2596 = vmatpush3.bf16.msra.mxu1 %v2593_v12  ;;  %v1803_v12 = vld [vmem:[%s3738_s9 + $0x38] sm:$0xff]  ;;  %2534 = vmatprep.mubr.msk.f32.mxu0 %vm1658_vm1, %v1989_v48  ;;  %v1815_v17 = vpop.permute.xlu0 %1814 }
 0x228   :  { %v2597_v42 = vpack.c.bf16 %v1599_v57, %v1598_v38  ;;  %v1586_v31 = vadd.f32 %v1585_v15, %v1457_v39  ;;  %v1820_v57 = vpop.permute.xlu1 %1819 }
 0x229   :  { %v1601_v46 = vmax.f32 %v1591_v25, 0.0 }
 0x22a   :  { %v1600_v49 = vmax.f32 %v1586_v31, 0.0  ;;  %2598 = vmatprep.subr.bf16.mxu1 %v2597_v42 }
 0x22b   :  { %2600 = vmatpush3.bf16.msra.mxu1 %v2597_v42  ;;  %v1825_v39 = vpop.permute.xlu0 %1824 }
 0x22c   :  { %v2601_v58 = vpack.c.bf16 %v1601_v46, %v1600_v49  ;;  %v1830_v38 = vpop.permute.xlu1 %1829 }
 0x22e   :  { %2602 = vmatprep.subr.bf16.mxu1 %v2601_v58 }
 0x22f   :  { %2604 = vmatpush3.bf16.msra.mxu1 %v2601_v58 }
 0x232   :  { %2479 = vmatmul.mubr.msk.f32.vlgmr.msra.gmra.mrb[0].mxu1 %vm1658_vm1, %v1603_v33 }
 0x233   :  { %2481 = vmatprep.mubr.msk.f32.mxu1 %vm1658_vm1, %v1604_v40  ;;  %v1840_v40 = vpop.permute.xlu1 %1839 }
 0x236   :  { %2482 = vmatmul.mubr.msk.f32.gmra.mrb[2].mxu1 %vm1658_vm1, %v1605_v63 }
 0x237   :  { %2484 = vmatprep.mubr.msk.f32.mxu1 %vm1658_vm1, %v1606_v8 }
 0x23a   :  { %2485 = vmatmul.mubr.msk.f32.gmra.mrb[4].mxu1 %vm1658_vm1, %v1607_v22  ;;  %v1835_v22 = vpop.permute.xlu0 %1834 }
 0x23b   :  { %2487 = vmatprep.mubr.msk.f32.mxu1 %vm1658_vm1, %v1608_v45 }
 0x23e   :  { %2488 = vmatmul.mubr.msk.f32.gmra.mrb[6].mxu1 %vm1658_vm1, %v1609_v34 }
 0x23f   :  { %2506 = vmatprep.mubr.msk.f32.mxu1 %vm1658_vm1, %v1796_v0 }
 0x305   :  { %v2480_v56 = vpop.f32.mrb[0].mxu1 }
 0x306   :  { %v1755_v11 = vadd.f32 %v2480_v56, %v1626_v62  ;;  %v1749_v61 = vpop.f32.mrb[1].mxu1 }
 0x307   :  { %v1750_v43 = vadd.f32 %v1749_v61, %v1621_v44 }
 0x308   :  { %v1789_v7 = vmax.f32 %v1755_v11, 0.0  ;;  %v1850_v11 = vpop.permute.xlu1 %1849 }
 0x309   :  { %v1788_v2 = vmax.f32 %v1750_v43, 0.0  ;;  %v2483_v23 = vpop.f32.mrb[2].mxu1 }
 0x30a   :  { %v1765_v26 = vadd.f32 %v2483_v23, %v1636_v60  ;;  %v1759_v28 = vpop.f32.mrb[3].mxu1 }
 0x30b   :  { %v2605_v3 = vpack.c.bf16 %v1789_v7, %v1788_v2  ;;  %v1760_v53 = vadd.f32 %v1759_v28, %v1631_v4  ;;  %v1845_v7 = vpop.permute.xlu0 %1844 }
 0x30c   :  { %v1791_v51 = vmax.f32 %v1765_v26, 0.0 }
 0x30d   :  { %v1790_v1 = vmax.f32 %v1760_v53, 0.0  ;;  %v2486_v24 = vpop.f32.mrb[4].mxu1  ;;  %2606 = vmatprep.subr.bf16.mxu1 %v2605_v3 }
 0x30e   :  { %v1775_v37 = vadd.f32 %v2486_v24, %v1646_v35  ;;  %v1769_v9 = vpop.f32.mrb[5].mxu1  ;;  %2608 = vmatpush3.bf16.msra.mxu1 %v2605_v3  ;;  %v1993_v24 = vld [vmem:[%s3739_s11 + $0x20] sm:$0xff] }
 0x30f   :  { %v2609_v18 = vpack.c.bf16 %v1791_v51, %v1790_v1  ;;  %v1770_v47 = vadd.f32 %v1769_v9, %v1641_v21  ;;  %v1990_v21 = vld [vmem:[%s3739_s11 + $0x8] sm:$0xff]  ;;  %v1991_v51 = vld [vmem:[%s3739_s11 + $0x10] sm:$0xff]  ;;  %v1992_v1 = vld [vmem:[%s3739_s11 + $0x18] sm:$0xff] }
 0x310   :  { %v1793_v36 = vmax.f32 %v1775_v37, 0.0  ;;  %v1994_v37 = vld [vmem:[%s3739_s11 + $0x28] sm:$0xff]  ;;  %v1995_v9 = vld [vmem:[%s3739_s11 + $0x30] sm:$0xff] }
 0x311   :  { %v1792_v20 = vmax.f32 %v1770_v47, 0.0  ;;  %v2489_v32 = vpop.f32.mrb[6].mxu1  ;;  %2610 = vmatprep.subr.bf16.mxu1 %v2609_v18  ;;  %v2716_v47 = vmov 0.0|0.0  }
 0x312   :  { %v1785_v59 = vadd.f32 %v2489_v32, %v1656_v10  ;;  %v1779_v41 = vpop.f32.mrb[7].mxu1  ;;  %2612 = vmatpush3.bf16.msra.mxu1 %v2609_v18  ;;  %v1996_v18 = vld [vmem:[%s3739_s11 + $0x38] sm:$0xff]  ;;  %v2013_v10 = vpop.permute.xlu1 %2012 }
 0x313   :  { %v2613_v14 = vpack.c.bf16 %v1793_v36, %v1792_v20  ;;  %v1780_v30 = vadd.f32 %v1779_v41, %v1651_v54  ;;  %v2718_v36 = vmov 0.0   ;;  %v2008_v20 = vpop.permute.xlu0 %2007 }
 0x314   :  { %v1795_v55 = vmax.f32 %v1785_v59, 0.0 }
 0x315   :  { %v1794_v5 = vmax.f32 %v1780_v30, 0.0  ;;  %2614 = vmatprep.subr.bf16.mxu1 %v2613_v14 }
 0x316   :  { %2616 = vmatpush3.bf16.msra.mxu1 %v2613_v14  ;;  %v2023_v32 = vpop.permute.xlu1 %2022 }
 0x317   :  { %v2617_v19 = vpack.c.bf16 %v1795_v55, %v1794_v5  ;;  %v2018_v59 = vpop.permute.xlu0 %2017 }
 0x319   :  { %2618 = vmatprep.subr.bf16.mxu1 %v2617_v19 }
 0x31a   :  { %2620 = vmatpush3.bf16.msra.mxu1 %v2617_v19 }
 0x31b   :  { %2637 = vmatprep.subr.bf16.mxu1 %v2716_v47 }
 0x31d   :  { %2507 = vmatmul.mubr.msk.f32.vlgmr.msra.gmra.mrb[8].mxu1 %vm1658_vm1, %v1797_v27 }
 0x31e   :  { %2509 = vmatprep.mubr.msk.f32.mxu1 %vm1658_vm1, %v1798_v52 }
 0x321   :  { %2510 = vmatmul.mubr.msk.f32.gmra.mrb[10].mxu1 %vm1658_vm1, %v1799_v16  ;;  %v2033_v16 = vpop.permute.xlu1 %2032 }
 0x322   :  { %2512 = vmatprep.mubr.msk.f32.mxu1 %vm1658_vm1, %v1800_v29 }
 0x325   :  { %2513 = vmatmul.mubr.msk.f32.gmra.mrb[12].mxu1 %vm1658_vm1, %v1801_v50 }
 0x326   :  { %2515 = vmatprep.mubr.msk.f32.mxu1 %vm1658_vm1, %v1802_v13  ;;  %v2028_v13 = vpop.permute.xlu0 %2027 }
 0x329   :  { %2516 = vmatmul.mubr.msk.f32.gmra.mrb[14].mxu1 %vm1658_vm1, %v1803_v12 }
 0x32a   :  { %2562 = vmatprep.mubr.msk.f32.mxu1 %vm2717_vm10, %v2718_v36 }
 0x3f0   :  { %v2508_v6 = vpop.f32.mrb[8].mxu1 }
 0x3f1   :  { %v1948_v25 = vadd.f32 %v2508_v6, %v1820_v57  ;;  %v1942_v15 = vpop.f32.mrb[9].mxu1 }
 0x3f2   :  { %v1943_v42 = vadd.f32 %v1942_v15, %v1815_v17  ;;  %v2043_v15 = vpop.permute.xlu1 %2042 }
 0x3f3   :  { %v1982_v31 = vmax.f32 %v1948_v25, 0.0 }
 0x3f4   :  { %v1981_v46 = vmax.f32 %v1943_v42, 0.0  ;;  %v2511_v49 = vpop.f32.mrb[10].mxu1 }
 0x3f5   :  { %v1958_v58 = vadd.f32 %v2511_v49, %v1830_v38  ;;  %v1952_v33 = vpop.f32.mrb[11].mxu1 }
 0x3f6   :  { %v2621_v63 = vpack.c.bf16 %v1982_v31, %v1981_v46  ;;  %v1953_v8 = vadd.f32 %v1952_v33, %v1825_v39  ;;  %v2038_v46 = vpop.permute.xlu0 %2037 }
 0x3f7   :  { %v1984_v45 = vmax.f32 %v1958_v58, 0.0 }
 0x3f8   :  { %v1983_v34 = vmax.f32 %v1953_v8, 0.0  ;;  %v2514_v0 = vpop.f32.mrb[12].mxu1  ;;  %2622 = vmatprep.subr.bf16.mxu0 %v2621_v63 }
 0x3f9   :  { %v1968_v62 = vadd.f32 %v2514_v0, %v1840_v40  ;;  %v1962_v44 = vpop.f32.mrb[13].mxu1  ;;  %2624 = vmatpush3.bf16.msra.mxu0 %v2621_v63 }
 0x3fa   :  { %v2625_v60 = vpack.c.bf16 %v1984_v45, %v1983_v34  ;;  %v1963_v56 = vadd.f32 %v1962_v44, %v1835_v22  ;;  %v2182_v45 = vld [vmem:[%s3740_s13] sm:$0x3]  ;;  %v2187_v34 = vpop.permute.xlu0 %2186 }
 0x3fb   :  { %v1986_v4 = vmax.f32 %v1968_v62, 0.0 }
 0x3fc   :  { %v1985_v61 = vmax.f32 %v1963_v56, 0.0  ;;  %v2517_v43 = vpop.f32.mrb[14].mxu1  ;;  %2626 = vmatprep.subr.bf16.mxu0 %v2625_v60 }
 0x3fd   :  { %v1978_v2 = vadd.f32 %v2517_v43, %v1850_v11  ;;  %v1972_v23 = vpop.f32.mrb[15].mxu1  ;;  %2628 = vmatpush3.bf16.msra.mxu0 %v2625_v60 }
 0x3fe   :  { %v2629_v26 = vpack.c.bf16 %v1986_v4, %v1985_v61  ;;  %v1973_v28 = vadd.f32 %v1972_v23, %v1845_v7 }
 0x3ff   :  { %v1988_v35 = vmax.f32 %v1978_v2, 0.0 }
 0x400   :  { %v1987_v3 = vmax.f32 %v1973_v28, 0.0  ;;  %2630 = vmatprep.subr.bf16.mxu0 %v2629_v26 }
 0x401   :  { %2632 = vmatpush3.bf16.msra.mxu0 %v2629_v26 }
 0x402   :  { %v2633_v53 = vpack.c.bf16 %v1988_v35, %v1987_v3 }
 0x404   :  { %2634 = vmatprep.subr.bf16.mxu0 %v2633_v53 }
 0x405   :  { %2636 = vmatpush3.bf16.msra.mxu0 %v2633_v53 }
 0x408   :  { %2535 = vmatmul.mubr.msk.f32.vlgmr.msra.gmra.mrb[8].mxu0 %vm1658_vm1, %v1990_v21 }
 0x409   :  { %2537 = vmatprep.mubr.msk.f32.mxu0 %vm1658_vm1, %v1991_v51 }
 0x40c   :  { %2538 = vmatmul.mubr.msk.f32.gmra.mrb[10].mxu0 %vm1658_vm1, %v1992_v1 }
 0x40d   :  { %2540 = vmatprep.mubr.msk.f32.mxu0 %vm1658_vm1, %v1993_v24 }
 0x410   :  { %2541 = vmatmul.mubr.msk.f32.gmra.mrb[12].mxu0 %vm1658_vm1, %v1994_v37 }
 0x411   :  { %2543 = vmatprep.mubr.msk.f32.mxu0 %vm1658_vm1, %v1995_v9 }
 0x414   :  { %2544 = vmatmul.mubr.msk.f32.gmra.mrb[14].mxu0 %vm1658_vm1, %v1996_v18 }
 0x4db   :  { %v2536_v54 = vpop.f32.mrb[8].mxu0 }
 0x4dc   :  { %v2141_v41 = vadd.f32 %v2536_v54, %v2013_v10  ;;  %v2135_v14 = vpop.f32.mrb[9].mxu0 }
 0x4dd   :  { %v2136_v30 = vadd.f32 %v2135_v14, %v2008_v20 }
 0x4de   :  { %v2175_v55 = vmax.f32 %v2141_v41, 0.0 }
 0x4df   :  { %v2174_v5 = vmax.f32 %v2136_v30, 0.0  ;;  %v2539_v19 = vpop.f32.mrb[10].mxu0 }
 0x4e0   :  { %v2151_v27 = vadd.f32 %v2539_v19, %v2023_v32  ;;  %v2145_v52 = vpop.f32.mrb[11].mxu0 }
 0x4e1   :  { %v2638_v29 = vpack.c.bf16 %v2175_v55, %v2174_v5  ;;  %v2146_v50 = vadd.f32 %v2145_v52, %v2018_v59 }
 0x4e2   :  { %v2177_v12 = vmax.f32 %v2151_v27, 0.0 }
 0x4e3   :  { %v2176_v48 = vmax.f32 %v2146_v50, 0.0  ;;  %v2542_v57 = vpop.f32.mrb[12].mxu0  ;;  %2639 = vmatpush3.bf16.msra.mxu1 %v2638_v29 }
 0x4e4   :  { %v2161_v17 = vadd.f32 %v2542_v57, %v2033_v16  ;;  %v2155_v38 = vpop.f32.mrb[13].mxu0  ;;  %2640 = vmatprep.subr.bf16.mxu1 %v2716_v47 }
 0x4e5   :  { %v2641_v6 = vpack.c.bf16 %v2177_v12, %v2176_v48  ;;  %v2156_v39 = vadd.f32 %v2155_v38, %v2028_v13 }
 0x4e6   :  { %v2179_v25 = vmax.f32 %v2161_v17, 0.0 }
 0x4e7   :  { %v2178_v42 = vmax.f32 %v2156_v39, 0.0  ;;  %v2545_v31 = vpop.f32.mrb[14].mxu0  ;;  %2642 = vmatpush3.bf16.msra.mxu1 %v2641_v6 }
 0x4e8   :  { %v2171_v49 = vadd.f32 %v2545_v31, %v2043_v15  ;;  %v2165_v58 = vpop.f32.mrb[15].mxu0  ;;  %2643 = vmatprep.subr.bf16.mxu1 %v2716_v47 }
 0x4e9   :  { %v2644_v33 = vpack.c.bf16 %v2179_v25, %v2178_v42  ;;  %v2166_v40 = vadd.f32 %v2165_v58, %v2038_v46 }
 0x4ea   :  { %v2181_v63 = vmax.f32 %v2171_v49, 0.0 }
 0x4eb   :  { %v2180_v8 = vmax.f32 %v2166_v40, 0.0  ;;  %2645 = vmatpush3.bf16.msra.mxu1 %v2644_v33 }
 0x4ec   :  { %2646 = vmatprep.subr.bf16.mxu1 %v2716_v47 }
 0x4ed   :  { %v2647_v22 = vpack.c.bf16 %v2181_v63, %v2180_v8 }
 0x4ef   :  { %2648 = vmatpush3.bf16.msra.mxu1 %v2647_v22 }
 0x4f2   :  { %2563 = vmatmul.mubr.msk.f32.vlgmr.msra.gmra.mrb[16].mxu1 %vm1658_vm1, %v2182_v45 }
 0x5c5   :  { %v2258_v0 = vpop.f32.mrb[16].mxu1 }
 0x5c6   :  { %v2259_v62 = vadd.f32 %v2258_v0, %v2187_v34  ;;  %v2564_v44 = vpop.f32.mrb[17].mxu1 }
 0x5c8   :  { %2262 = vst [vmem:[%s3741_s15] sm:$0x3] %v2259_v62 }

</bundles_post_ra>
